<compile_context>
chip_gen: v7x
topology: tpu7x:2x2x1
jax: 0.10.0
libtpu: 0.0.40
codegen_flags: <defaults>
</compile_context>

<pallas_src>
import functools

import numpy as np
import jax
import jax.numpy as jnp
from jax.experimental import pallas as pl
from jax.experimental.pallas import tpu as pltpu


# ----------------------------------------------------------------------------
# Pallas kernel: fused (bi)directional LSTM recurrence.
#   grid = (num_dir, T_pad // TT); h/c carried in f32 VMEM scratch.
# ----------------------------------------------------------------------------
def _bilstm_kernel(lens_ref, gates_ref, whh_ref, out_ref, hN_ref, cN_ref,
                   h_sc, c_sc, *, hidden, t_block, t_total):
    H = hidden
    TT = t_block
    d = pl.program_id(0)        # 0 = forward in time, 1 = backward in time
    g = pl.program_id(1)        # time-block counter for this direction

    @pl.when(g == 0)
    def _():
        h_sc[...] = jnp.zeros_like(h_sc)
        c_sc[...] = jnp.zeros_like(c_sc)

    B = h_sc.shape[0]
    whh = whh_ref[...]                                    # (H, 4H) bf16, resident
    lens_b = jnp.broadcast_to(lens_ref[...], (B, H))      # hoisted broadcast

    def step(tt, carry):
        # row inside this block / original-time index for this direction
        row = tt + d * (TT - 1 - 2 * tt)                  # fwd: tt     bwd: TT-1-tt
        base = g * TT + tt
        t_glob = base + d * (t_total - 1 - 2 * base)      # fwd: base   bwd: T-1-base

        h = h_sc[...]
        c = c_sc[...]
        # precomputed input projection (f32) + recurrent matmul (bf16 -> f32)
        gates = gates_ref[row] + jnp.dot(
            h.astype(jnp.bfloat16), whh, preferred_element_type=jnp.float32)

        i = jax.nn.sigmoid(gates[:, 0 * H:1 * H])
        f = jax.nn.sigmoid(gates[:, 1 * H:2 * H])
        gg = jnp.tanh(gates[:, 2 * H:3 * H])
        o = jax.nn.sigmoid(gates[:, 3 * H:4 * H])
        c_new = f * c + i * gg
        h_new = o * jnp.tanh(c_new)

        # packed-sequence semantics: freeze state / zero output on padded steps
        valid = t_glob < lens_b                           # (B, H) bool
        h_sc[...] = jnp.where(valid, h_new, h)
        c_sc[...] = jnp.where(valid, c_new, c)
        out_ref[row] = jnp.where(valid, h_new, 0.0)
        return carry

    jax.lax.fori_loop(0, TT, step, 0, unroll=True)

    @pl.when(g == pl.num_programs(1) - 1)
    def _():
        hN_ref[...] = h_sc[...]
        cN_ref[...] = c_sc[...]


def bilstm_layer_pallas(x, lengths, lp, *, bidirectional=True, block_t=8):
    """One (bi)directional LSTM layer over a padded time-major sequence.

    x: (T, B, E) float32, lengths: (B,) int32 (valid timesteps per sequence).
    Returns (layer_out (T, B, D*H), [h_n per direction], [c_n per direction]).
    """
    T, B, E = x.shape
    H = lp["w_hh_f"].shape[1]
    num_dir = 2 if bidirectional else 1

    TT = min(block_t, T)
    G = pl.cdiv(T, TT)
    T_pad = G * TT

    x_bf = x.astype(jnp.bfloat16)

    def input_proj(w_ih, b_ih, b_hh):
        # Hoisted input projection: one big bf16 matmul over all timesteps,
        # f32 accumulation, bias folded in; streamed to the kernel as f32.
        proj = jnp.einsum("tbe,ge->tbg", x_bf, w_ih.astype(jnp.bfloat16),
                          preferred_element_type=jnp.float32)
        proj = proj + (b_ih + b_hh).astype(jnp.float32)[None, None, :]
        if T_pad > T:
            proj = jnp.pad(proj, ((0, T_pad - T), (0, 0), (0, 0)))
        return proj

    gates = [input_proj(lp["w_ih_f"], lp["b_ih_f"], lp["b_hh_f"])]
    whh = [lp["w_hh_f"].T]
    if bidirectional:
        gates.append(input_proj(lp["w_ih_b"], lp["b_ih_b"], lp["b_hh_b"]))
        whh.append(lp["w_hh_b"].T)
    gates = jnp.stack(gates)                              # (D, T_pad, B, 4H) f32
    whh = jnp.stack(whh).astype(jnp.bfloat16)             # (D, H, 4H) bf16
    lens2d = lengths.astype(jnp.int32).reshape(B, 1)      # (B, 1)

    kernel = functools.partial(_bilstm_kernel, hidden=H, t_block=TT,
                               t_total=T_pad)

    def time_block(d, g):
        # forward walks time blocks 0..G-1, backward walks G-1..0
        return g + d * (G - 1 - 2 * g)

    out, hN, cN = pl.pallas_call(
        kernel,
        out_shape=(jax.ShapeDtypeStruct((num_dir, T_pad, B, H), jnp.float32),
                   jax.ShapeDtypeStruct((num_dir, B, H), jnp.float32),
                   jax.ShapeDtypeStruct((num_dir, B, H), jnp.float32)),
        grid_spec=pltpu.PrefetchScalarGridSpec(
            num_scalar_prefetch=0,
            grid=(num_dir, G),
            in_specs=[
                pl.BlockSpec((B, 1), lambda d, g: (0, 0)),          # lengths
                pl.BlockSpec((None, TT, B, 4 * H),                  # gates_ih
                             lambda d, g: (d, time_block(d, g), 0, 0)),
                pl.BlockSpec((None, H, 4 * H),                      # W_hh
                             lambda d, g: (d, 0, 0)),
            ],
            out_specs=[
                pl.BlockSpec((None, TT, B, H),
                             lambda d, g: (d, time_block(d, g), 0, 0)),
                pl.BlockSpec((None, B, H), lambda d, g: (d, 0, 0)),
                pl.BlockSpec((None, B, H), lambda d, g: (d, 0, 0)),
            ],
            scratch_shapes=[pltpu.VMEM((B, H), jnp.float32),
                            pltpu.VMEM((B, H), jnp.float32)],
        ),
        compiler_params=pltpu.CompilerParams(
            dimension_semantics=("parallel", "arbitrary"),
            vmem_limit_bytes=64 * 1024 * 1024),
    )(lens2d, gates, whh)

    outs = [out[dd, :T] for dd in range(num_dir)]
    layer_out = jnp.concatenate(outs, axis=-1) if num_dir > 1 else outs[0]
    return (layer_out,
            [hN[dd] for dd in range(num_dir)],
            [cN[dd] for dd in range(num_dir)])


# ----------------------------------------------------------------------------
# Pure-JAX reference layer (same bf16-matmul / f32-accumulate numerics).
# ----------------------------------------------------------------------------
def bilstm_layer_ref(x, lengths, lp, *, bidirectional=True):
    T, B, E = x.shape
    H = lp["w_hh_f"].shape[1]
    t_idx = jnp.arange(T, dtype=jnp.int32)[:, None]                 # (T, 1)
    valid = t_idx < lengths[None, :].astype(jnp.int32)              # (T, B)
    mask = valid.astype(jnp.float32)[:, :, None]                    # (T, B, 1)
    rev_idx = jnp.where(valid, lengths[None, :] - 1 - t_idx, t_idx)

    def one_dir(xx, w_ih, w_hh, b_ih, b_hh):
        gih = jnp.einsum("tbe,ge->tbg", xx.astype(jnp.bfloat16),
                         w_ih.astype(jnp.bfloat16),
                         preferred_element_type=jnp.float32) + (b_ih + b_hh)
        whh_t = w_hh.T.astype(jnp.bfloat16)

        def step(carry, gm):
            h, c = carry
            g_t, m_t = gm
            gates = g_t + jnp.dot(h.astype(jnp.bfloat16), whh_t,
                                  preferred_element_type=jnp.float32)
            i, f, gg, o = jnp.split(gates, 4, axis=-1)
            i = jax.nn.sigmoid(i)
            f = jax.nn.sigmoid(f)
            gg = jnp.tanh(gg)
            o = jax.nn.sigmoid(o)
            c_new = f * c + i * gg
            h_new = o * jnp.tanh(c_new)
            h2 = m_t * h_new + (1.0 - m_t) * h
            c2 = m_t * c_new + (1.0 - m_t) * c
            return (h2, c2), m_t * h_new

        init = (jnp.zeros((B, H), jnp.float32), jnp.zeros((B, H), jnp.float32))
        (hN, cN), outs = jax.lax.scan(step, init, (gih, mask))
        return outs, hN, cN

    out_f, h_f, c_f = one_dir(x, lp["w_ih_f"], lp["w_hh_f"],
                              lp["b_ih_f"], lp["b_hh_f"])
    if not bidirectional:
        return out_f, [h_f], [c_f]

    ridx_in = jnp.broadcast_to(rev_idx[:, :, None], x.shape)
    x_rev = jnp.take_along_axis(x, ridx_in, axis=0)
    out_r, h_b, c_b = one_dir(x_rev, lp["w_ih_b"], lp["w_hh_b"],
                              lp["b_ih_b"], lp["b_hh_b"])
    ridx_out = jnp.broadcast_to(rev_idx[:, :, None], out_r.shape)
    out_b = jnp.take_along_axis(out_r, ridx_out, axis=0)
    layer_out = jnp.concatenate([out_f, out_b], axis=-1)
    return layer_out, [h_f, h_b], [c_f, c_b]


# ----------------------------------------------------------------------------
# rnn_encoder forward (embedding + bidirectional multi-layer LSTM).
# ----------------------------------------------------------------------------
def rnn_encoder_forward(inputs, lengths, params, *, hidden_size, num_layers,
                        bidirectional=True, layer_fn=bilstm_layer_pallas):
    """inputs: (T, B) int32 token ids, lengths: (B,) int32 (sorted desc)."""
    T, B = inputs.shape
    layer_in = params["embedding"][inputs].astype(jnp.float32)      # (T, B, E)

    h_list, c_list = [], []
    for l in range(num_layers):
        layer_out, hs, cs = layer_fn(layer_in, lengths, params["layers"][l],
                                     bidirectional=bidirectional)
        h_list += hs
        c_list += cs
        layer_in = layer_out   # inference: dropout between layers is identity

    outputs = layer_in                                               # (T, B, D*H)
    h_n = jnp.stack(h_list, axis=0)                                  # (L*D, B, H)
    c_n = jnp.stack(c_list, axis=0)

    if bidirectional:
        outputs = outputs[:, :, :hidden_size] + outputs[:, :, hidden_size:]
        # original module keeps forward-direction states per layer ([::2])
        state = (h_n[::2], c_n[::2])
    else:
        state = (h_n, c_n)
    return outputs, state


# ----------------------------------------------------------------------------
# Deterministic parameter construction (PyTorch-like uniform(-1/sqrt(H), ...)).
# ----------------------------------------------------------------------------
def make_params(key, *, vocab, emb_size, hidden, num_layers, bidirectional):
    k = 1.0 / np.sqrt(hidden)
    keys = jax.random.split(key, 1 + num_layers)
    params = {
        "embedding": jax.random.normal(keys[0], (vocab, emb_size),
                                       jnp.float32) * 0.1,
        "layers": [],
    }
    num_dir = 2 if bidirectional else 1
    for l in range(num_layers):
        in_size = emb_size if l == 0 else hidden * num_dir
        lk = jax.random.split(keys[1 + l], 8)
        u = lambda kk, shape: jax.random.uniform(kk, shape, jnp.float32, -k, k)
        params["layers"].append({
            "w_ih_f": u(lk[0], (4 * hidden, in_size)),
            "w_hh_f": u(lk[1], (4 * hidden, hidden)),
            "b_ih_f": u(lk[2], (4 * hidden,)),
            "b_hh_f": u(lk[3], (4 * hidden,)),
            "w_ih_b": u(lk[4], (4 * hidden, in_size)),
            "w_hh_b": u(lk[5], (4 * hidden, hidden)),
            "b_ih_b": u(lk[6], (4 * hidden,)),
            "b_hh_b": u(lk[7], (4 * hidden,)),
        })
    return params


if __name__ == "__main__":
    T, B = 8, 2
    HIDDEN = 32
    EMB = 32          # config.sgm.emb_size == config.hidden_size (rnn input_size)
    VOCAB = 50
    NUM_LAYERS = 2
    BIDIR = True

    key = jax.random.PRNGKey(0)
    k_tok, k_par = jax.random.split(key)

    # time-major token ids, lengths sorted descending (pack_padded_sequence)
    inputs = jax.random.randint(k_tok, (T, B), 0, VOCAB, dtype=jnp.int32)
    lengths = jnp.array([8, 5], dtype=jnp.int32)

    params = make_params(k_par, vocab=VOCAB, emb_size=EMB, hidden=HIDDEN,
                         num_layers=NUM_LAYERS, bidirectional=BIDIR)

    # block_t=4 -> two time blocks per direction, exercising the state carry
    pallas_layer = functools.partial(bilstm_layer_pallas, block_t=4)
    out, (h_n, c_n) = rnn_encoder_forward(
        inputs, lengths, params, hidden_size=HIDDEN, num_layers=NUM_LAYERS,
        bidirectional=BIDIR, layer_fn=pallas_layer)
    jax.block_until_ready((out, h_n, c_n))

    # pure-JAX reference of the same forward for correctness
    out_r, (h_r, c_r) = rnn_encoder_forward(
        inputs, lengths, params, hidden_size=HIDDEN, num_layers=NUM_LAYERS,
        bidirectional=BIDIR, layer_fn=bilstm_layer_ref)
    jax.block_until_ready((out_r, h_r, c_r))

    assert out.shape == (T, B, HIDDEN)
    assert h_n.shape == (NUM_LAYERS, B, HIDDEN)
    assert c_n.shape == (NUM_LAYERS, B, HIDDEN)
    np.testing.assert_allclose(np.asarray(out), np.asarray(out_r),
                               rtol=2e-3, atol=2e-3)
    np.testing.assert_allclose(np.asarray(h_n), np.asarray(h_r),
                               rtol=2e-3, atol=2e-3)
    np.testing.assert_allclose(np.asarray(c_n), np.asarray(c_r),
                               rtol=2e-3, atol=2e-3)

    print("KERNEL_OK")
</pallas_src>

<mosaic_0001>
module attributes {stable_mosaic.version = 11 : i64} {
  func.func @_bilstm_kernel(%arg0: i32, %arg1: i32, %arg2: memref<2x1xi32, #tpu.memory_space<vmem>>, %arg3: memref<1x4x2x128xf32, #tpu.memory_space<vmem>>, %arg4: memref<1x32x128xbf16, #tpu.memory_space<vmem>>, %arg5: memref<1x4x2x32xf32, #tpu.memory_space<vmem>>, %arg6: memref<1x2x32xf32, #tpu.memory_space<vmem>>, %arg7: memref<1x2x32xf32, #tpu.memory_space<vmem>>, %arg8: memref<2x32xf32, #tpu.memory_space<vmem>>, %arg9: memref<2x32xf32, #tpu.memory_space<vmem>>) attributes {dimension_semantics = [#tpu.dimension_semantics<parallel>, #tpu.dimension_semantics<arbitrary>], iteration_bounds = array<i64: 2, 2>, scalar_prefetch = 0 : i64, scratch_operands = 2 : i64, tpu.core_type = #tpu.core_type<tc>, window_params = [{pipeline_mode = #tpu.pipeline_mode<synchronous>, transform_indices = @transform_0, window_bounds = array<i64: 2, 1>}, {transform_indices = @transform_1, window_bounds = array<i64: 1, 4, 2, 128>}, {transform_indices = @transform_2, window_bounds = array<i64: 1, 32, 128>}, {transform_indices = @transform_3, window_bounds = array<i64: 1, 4, 2, 32>}, {transform_indices = @transform_4, window_bounds = array<i64: 1, 2, 32>}, {transform_indices = @transform_5, window_bounds = array<i64: 1, 2, 32>}]} {
    %c0_i32 = arith.constant 0 : i32
    %0 = arith.cmpi eq, %arg1, %c0_i32 : i32
    %1 = arith.extui %0 : i1 to i32
    %c0_i32_0 = arith.constant 0 : i32
    %2 = arith.cmpi ne, %1, %c0_i32_0 : i32
    scf.if %2 {
      %cst_102 = arith.constant 0.000000e+00 : f32
      %231 = vector.broadcast %cst_102 : f32 to vector<2x32xf32>
      %c0_103 = arith.constant 0 : index
      %c0_104 = arith.constant 0 : index
      %232 = vector.load %arg8[%c0_103, %c0_104] : memref<2x32xf32, #tpu.memory_space<vmem>>, vector<2x32xf32>
      tpu.vector_store %arg8[%c0_103, %c0_104], %231 {strides = array<i32>} : memref<2x32xf32, #tpu.memory_space<vmem>>, vector<2x32xf32>,
      %cst_105 = arith.constant 0.000000e+00 : f32
      %233 = vector.broadcast %cst_105 : f32 to vector<2x32xf32>
      %c0_106 = arith.constant 0 : index
      %c0_107 = arith.constant 0 : index
      %234 = vector.load %arg9[%c0_106, %c0_107] : memref<2x32xf32, #tpu.memory_space<vmem>>, vector<2x32xf32>
      tpu.vector_store %arg9[%c0_106, %c0_107], %233 {strides = array<i32>} : memref<2x32xf32, #tpu.memory_space<vmem>>, vector<2x32xf32>,
    } else {
    }
    %c0 = arith.constant 0 : index
    %c0_1 = arith.constant 0 : index
    %c0_2 = arith.constant 0 : index
    %3 = vector.load %arg4[%c0, %c0_1, %c0_2] : memref<1x32x128xbf16, #tpu.memory_space<vmem>>, vector<1x32x128xbf16>
    %4 = vector.shape_cast %3 : vector<1x32x128xbf16> to vector<32x128xbf16>
    %c0_3 = arith.constant 0 : index
    %c0_4 = arith.constant 0 : index
    %5 = vector.load %arg2[%c0_3, %c0_4] : memref<2x1xi32, #tpu.memory_space<vmem>>, vector<2x1xi32>
    %6 = vector.shape_cast %5 : vector<2x1xi32> to vector<2x1xi32>
    %7 = vector.broadcast %6 : vector<2x1xi32> to vector<2x32xi32>
    %c0_i32_5 = arith.constant 0 : i32
    %c2_i32 = arith.constant 2 : i32
    %8 = arith.muli %c2_i32, %c0_i32_5 : i32
    %c3_i32 = arith.constant 3 : i32
    %9 = arith.subi %c3_i32, %8 : i32
    %10 = arith.muli %arg0, %9 : i32
    %11 = arith.addi %c0_i32_5, %10 : i32
    %c4_i32 = arith.constant 4 : i32
    %12 = arith.muli %arg1, %c4_i32 : i32
    %13 = arith.addi %12, %c0_i32_5 : i32
    %c2_i32_6 = arith.constant 2 : i32
    %14 = arith.muli %c2_i32_6, %13 : i32
    %c7_i32 = arith.constant 7 : i32
    %15 = arith.subi %c7_i32, %14 : i32
    %16 = arith.muli %arg0, %15 : i32
    %17 = arith.addi %13, %16 : i32
    %c0_7 = arith.constant 0 : index
    %c0_8 = arith.constant 0 : index
    %18 = vector.load %arg8[%c0_7, %c0_8] : memref<2x32xf32, #tpu.memory_space<vmem>>, vector<2x32xf32>
    %c0_9 = arith.constant 0 : index
    %c0_10 = arith.constant 0 : index
    %19 = vector.load %arg9[%c0_9, %c0_10] : memref<2x32xf32, #tpu.memory_space<vmem>>, vector<2x32xf32>
    %c0_11 = arith.constant 0 : index
    %20 = arith.index_cast %11 : i32 to index
    %c0_12 = arith.constant 0 : index
    %c0_13 = arith.constant 0 : index
    %21 = vector.load %arg3[%c0_11, %20, %c0_12, %c0_13] : memref<1x4x2x128xf32, #tpu.memory_space<vmem>>, vector<1x1x2x128xf32>
    %22 = vector.shape_cast %21 : vector<1x1x2x128xf32> to vector<2x128xf32>
    %23 = arith.truncf %18 : vector<2x32xf32> to vector<2x32xbf16>
    %cst = arith.constant dense<0.000000e+00> : vector<2x128xf32>
    %24 = tpu.matmul %23, %4, %cst {dimension_numbers = #tpu.dot_dimension_numbers<[1], [0], [0], [1], [0, 0, 1, 1], [], []>} : vector<2x32xbf16>, vector<32x128xbf16>, vector<2x128xf32> -> vector<2x128xf32>
    %25 = arith.addf %22, %24 : vector<2x128xf32>
    %26 = vector.extract_strided_slice %25 {offsets = [0, 0], sizes = [2, 32], strides = [1, 1]} : vector<2x128xf32> to vector<2x32xf32>
    %27 = arith.negf %26 : vector<2x32xf32>
    %28 = math.exp %27 : vector<2x32xf32>
    %cst_14 = arith.constant 1.000000e+00 : f32
    %29 = vector.broadcast %cst_14 : f32 to vector<2x32xf32>
    %30 = arith.addf %29, %28 : vector<2x32xf32>
    %31 = arith.divf %29, %30 : vector<2x32xf32>
    %32 = vector.extract_strided_slice %25 {offsets = [0, 32], sizes = [2, 32], strides = [1, 1]} : vector<2x128xf32> to vector<2x32xf32>
    %33 = arith.negf %32 : vector<2x32xf32>
    %34 = math.exp %33 : vector<2x32xf32>
    %cst_15 = arith.constant 1.000000e+00 : f32
    %35 = vector.broadcast %cst_15 : f32 to vector<2x32xf32>
    %36 = arith.addf %35, %34 : vector<2x32xf32>
    %37 = arith.divf %35, %36 : vector<2x32xf32>
    %38 = vector.extract_strided_slice %25 {offsets = [0, 64], sizes = [2, 32], strides = [1, 1]} : vector<2x128xf32> to vector<2x32xf32>
    %39 = math.tanh %38 : vector<2x32xf32>
    %40 = vector.extract_strided_slice %25 {offsets = [0, 96], sizes = [2, 32], strides = [1, 1]} : vector<2x128xf32> to vector<2x32xf32>
    %41 = arith.negf %40 : vector<2x32xf32>
    %42 = math.exp %41 : vector<2x32xf32>
    %cst_16 = arith.constant 1.000000e+00 : f32
    %43 = vector.broadcast %cst_16 : f32 to vector<2x32xf32>
    %44 = arith.addf %43, %42 : vector<2x32xf32>
    %45 = arith.divf %43, %44 : vector<2x32xf32>
    %46 = arith.mulf %37, %19 : vector<2x32xf32>
    %47 = arith.mulf %31, %39 : vector<2x32xf32>
    %48 = arith.addf %46, %47 : vector<2x32xf32>
    %49 = math.tanh %48 : vector<2x32xf32>
    %50 = arith.mulf %45, %49 : vector<2x32xf32>
    %51 = vector.broadcast %17 : i32 to vector<2x32xi32>
    %52 = arith.cmpi slt, %51, %7 : vector<2x32xi32>
    %53 = arith.select %52, %50, %18 : vector<2x32xi1>, vector<2x32xf32>
    %c0_17 = arith.constant 0 : index
    %c0_18 = arith.constant 0 : index
    %54 = vector.load %arg8[%c0_17, %c0_18] : memref<2x32xf32, #tpu.memory_space<vmem>>, vector<2x32xf32>
    tpu.vector_store %arg8[%c0_17, %c0_18], %53 {strides = array<i32>} : memref<2x32xf32, #tpu.memory_space<vmem>>, vector<2x32xf32>,
    %55 = arith.select %52, %48, %19 : vector<2x32xi1>, vector<2x32xf32>
    %c0_19 = arith.constant 0 : index
    %c0_20 = arith.constant 0 : index
    %56 = vector.load %arg9[%c0_19, %c0_20] : memref<2x32xf32, #tpu.memory_space<vmem>>, vector<2x32xf32>
    tpu.vector_store %arg9[%c0_19, %c0_20], %55 {strides = array<i32>} : memref<2x32xf32, #tpu.memory_space<vmem>>, vector<2x32xf32>,
    %cst_21 = arith.constant 0.000000e+00 : f32
    %57 = vector.broadcast %cst_21 : f32 to vector<2x32xf32>
    %58 = arith.select %52, %50, %57 : vector<2x32xi1>, vector<2x32xf32>
    %c0_22 = arith.constant 0 : index
    %59 = arith.index_cast %11 : i32 to index
    %c0_23 = arith.constant 0 : index
    %c0_24 = arith.constant 0 : index
    %60 = vector.load %arg5[%c0_22, %59, %c0_23, %c0_24] : memref<1x4x2x32xf32, #tpu.memory_space<vmem>>, vector<1x1x2x32xf32>
    %61 = vector.shape_cast %60 : vector<1x1x2x32xf32> to vector<2x32xf32>
    %62 = vector.shape_cast %58 : vector<2x32xf32> to vector<1x1x2x32xf32>
    tpu.vector_store %arg5[%c0_22, %59, %c0_23, %c0_24], %62 {strides = array<i32>} : memref<1x4x2x32xf32, #tpu.memory_space<vmem>>, vector<1x1x2x32xf32>,
    %c1_i32 = arith.constant 1 : i32
    %c2_i32_25 = arith.constant 2 : i32
    %63 = arith.muli %c2_i32_25, %c1_i32 : i32
    %c3_i32_26 = arith.constant 3 : i32
    %64 = arith.subi %c3_i32_26, %63 : i32
    %65 = arith.muli %arg0, %64 : i32
    %66 = arith.addi %c1_i32, %65 : i32
    %c4_i32_27 = arith.constant 4 : i32
    %67 = arith.muli %arg1, %c4_i32_27 : i32
    %68 = arith.addi %67, %c1_i32 : i32
    %c2_i32_28 = arith.constant 2 : i32
    %69 = arith.muli %c2_i32_28, %68 : i32
    %c7_i32_29 = arith.constant 7 : i32
    %70 = arith.subi %c7_i32_29, %69 : i32
    %71 = arith.muli %arg0, %70 : i32
    %72 = arith.addi %68, %71 : i32
    %c0_30 = arith.constant 0 : index
    %c0_31 = arith.constant 0 : index
    %73 = vector.load %arg8[%c0_30, %c0_31] : memref<2x32xf32, #tpu.memory_space<vmem>>, vector<2x32xf32>
    %c0_32 = arith.constant 0 : index
    %c0_33 = arith.constant 0 : index
    %74 = vector.load %arg9[%c0_32, %c0_33] : memref<2x32xf32, #tpu.memory_space<vmem>>, vector<2x32xf32>
    %c0_34 = arith.constant 0 : index
    %75 = arith.index_cast %66 : i32 to index
    %c0_35 = arith.constant 0 : index
    %c0_36 = arith.constant 0 : index
    %76 = vector.load %arg3[%c0_34, %75, %c0_35, %c0_36] : memref<1x4x2x128xf32, #tpu.memory_space<vmem>>, vector<1x1x2x128xf32>
    %77 = vector.shape_cast %76 : vector<1x1x2x128xf32> to vector<2x128xf32>
    %78 = arith.truncf %73 : vector<2x32xf32> to vector<2x32xbf16>
    %cst_37 = arith.constant dense<0.000000e+00> : vector<2x128xf32>
    %79 = tpu.matmul %78, %4, %cst_37 {dimension_numbers = #tpu.dot_dimension_numbers<[1], [0], [0], [1], [0, 0, 1, 1], [], []>} : vector<2x32xbf16>, vector<32x128xbf16>, vector<2x128xf32> -> vector<2x128xf32>
    %80 = arith.addf %77, %79 : vector<2x128xf32>
    %81 = vector.extract_strided_slice %80 {offsets = [0, 0], sizes = [2, 32], strides = [1, 1]} : vector<2x128xf32> to vector<2x32xf32>
    %82 = arith.negf %81 : vector<2x32xf32>
    %83 = math.exp %82 : vector<2x32xf32>
    %cst_38 = arith.constant 1.000000e+00 : f32
    %84 = vector.broadcast %cst_38 : f32 to vector<2x32xf32>
    %85 = arith.addf %84, %83 : vector<2x32xf32>
    %86 = arith.divf %84, %85 : vector<2x32xf32>
    %87 = vector.extract_strided_slice %80 {offsets = [0, 32], sizes = [2, 32], strides = [1, 1]} : vector<2x128xf32> to vector<2x32xf32>
    %88 = arith.negf %87 : vector<2x32xf32>
    %89 = math.exp %88 : vector<2x32xf32>
    %cst_39 = arith.constant 1.000000e+00 : f32
    %90 = vector.broadcast %cst_39 : f32 to vector<2x32xf32>
    %91 = arith.addf %90, %89 : vector<2x32xf32>
    %92 = arith.divf %90, %91 : vector<2x32xf32>
    %93 = vector.extract_strided_slice %80 {offsets = [0, 64], sizes = [2, 32], strides = [1, 1]} : vector<2x128xf32> to vector<2x32xf32>
    %94 = math.tanh %93 : vector<2x32xf32>
    %95 = vector.extract_strided_slice %80 {offsets = [0, 96], sizes = [2, 32], strides = [1, 1]} : vector<2x128xf32> to vector<2x32xf32>
    %96 = arith.negf %95 : vector<2x32xf32>
    %97 = math.exp %96 : vector<2x32xf32>
    %cst_40 = arith.constant 1.000000e+00 : f32
    %98 = vector.broadcast %cst_40 : f32 to vector<2x32xf32>
    %99 = arith.addf %98, %97 : vector<2x32xf32>
    %100 = arith.divf %98, %99 : vector<2x32xf32>
    %101 = arith.mulf %92, %74 : vector<2x32xf32>
    %102 = arith.mulf %86, %94 : vector<2x32xf32>
    %103 = arith.addf %101, %102 : vector<2x32xf32>
    %104 = math.tanh %103 : vector<2x32xf32>
    %105 = arith.mulf %100, %104 : vector<2x32xf32>
    %106 = vector.broadcast %72 : i32 to vector<2x32xi32>
    %107 = arith.cmpi slt, %106, %7 : vector<2x32xi32>
    %108 = arith.select %107, %105, %73 : vector<2x32xi1>, vector<2x32xf32>
    %c0_41 = arith.constant 0 : index
    %c0_42 = arith.constant 0 : index
    %109 = vector.load %arg8[%c0_41, %c0_42] : memref<2x32xf32, #tpu.memory_space<vmem>>, vector<2x32xf32>
    tpu.vector_store %arg8[%c0_41, %c0_42], %108 {strides = array<i32>} : memref<2x32xf32, #tpu.memory_space<vmem>>, vector<2x32xf32>,
    %110 = arith.select %107, %103, %74 : vector<2x32xi1>, vector<2x32xf32>
    %c0_43 = arith.constant 0 : index
    %c0_44 = arith.constant 0 : index
    %111 = vector.load %arg9[%c0_43, %c0_44] : memref<2x32xf32, #tpu.memory_space<vmem>>, vector<2x32xf32>
    tpu.vector_store %arg9[%c0_43, %c0_44], %110 {strides = array<i32>} : memref<2x32xf32, #tpu.memory_space<vmem>>, vector<2x32xf32>,
    %cst_45 = arith.constant 0.000000e+00 : f32
    %112 = vector.broadcast %cst_45 : f32 to vector<2x32xf32>
    %113 = arith.select %107, %105, %112 : vector<2x32xi1>, vector<2x32xf32>
    %c0_46 = arith.constant 0 : index
    %114 = arith.index_cast %66 : i32 to index
    %c0_47 = arith.constant 0 : index
    %c0_48 = arith.constant 0 : index
    %115 = vector.load %arg5[%c0_46, %114, %c0_47, %c0_48] : memref<1x4x2x32xf32, #tpu.memory_space<vmem>>, vector<1x1x2x32xf32>
    %116 = vector.shape_cast %115 : vector<1x1x2x32xf32> to vector<2x32xf32>
    %117 = vector.shape_cast %113 : vector<2x32xf32> to vector<1x1x2x32xf32>
    tpu.vector_store %arg5[%c0_46, %114, %c0_47, %c0_48], %117 {strides = array<i32>} : memref<1x4x2x32xf32, #tpu.memory_space<vmem>>, vector<1x1x2x32xf32>,
    %c2_i32_49 = arith.constant 2 : i32
    %c2_i32_50 = arith.constant 2 : i32
    %118 = arith.muli %c2_i32_50, %c2_i32_49 : i32
    %c3_i32_51 = arith.constant 3 : i32
    %119 = arith.subi %c3_i32_51, %118 : i32
    %120 = arith.muli %arg0, %119 : i32
    %121 = arith.addi %c2_i32_49, %120 : i32
    %c4_i32_52 = arith.constant 4 : i32
    %122 = arith.muli %arg1, %c4_i32_52 : i32
    %123 = arith.addi %122, %c2_i32_49 : i32
    %c2_i32_53 = arith.constant 2 : i32
    %124 = arith.muli %c2_i32_53, %123 : i32
    %c7_i32_54 = arith.constant 7 : i32
    %125 = arith.subi %c7_i32_54, %124 : i32
    %126 = arith.muli %arg0, %125 : i32
    %127 = arith.addi %123, %126 : i32
    %c0_55 = arith.constant 0 : index
    %c0_56 = arith.constant 0 : index
    %128 = vector.load %arg8[%c0_55, %c0_56] : memref<2x32xf32, #tpu.memory_space<vmem>>, vector<2x32xf32>
    %c0_57 = arith.constant 0 : index
    %c0_58 = arith.constant 0 : index
    %129 = vector.load %arg9[%c0_57, %c0_58] : memref<2x32xf32, #tpu.memory_space<vmem>>, vector<2x32xf32>
    %c0_59 = arith.constant 0 : index
    %130 = arith.index_cast %121 : i32 to index
    %c0_60 = arith.constant 0 : index
    %c0_61 = arith.constant 0 : index
    %131 = vector.load %arg3[%c0_59, %130, %c0_60, %c0_61] : memref<1x4x2x128xf32, #tpu.memory_space<vmem>>, vector<1x1x2x128xf32>
    %132 = vector.shape_cast %131 : vector<1x1x2x128xf32> to vector<2x128xf32>
    %133 = arith.truncf %128 : vector<2x32xf32> to vector<2x32xbf16>
    %cst_62 = arith.constant dense<0.000000e+00> : vector<2x128xf32>
    %134 = tpu.matmul %133, %4, %cst_62 {dimension_numbers = #tpu.dot_dimension_numbers<[1], [0], [0], [1], [0, 0, 1, 1], [], []>} : vector<2x32xbf16>, vector<32x128xbf16>, vector<2x128xf32> -> vector<2x128xf32>
    %135 = arith.addf %132, %134 : vector<2x128xf32>
    %136 = vector.extract_strided_slice %135 {offsets = [0, 0], sizes = [2, 32], strides = [1, 1]} : vector<2x128xf32> to vector<2x32xf32>
    %137 = arith.negf %136 : vector<2x32xf32>
    %138 = math.exp %137 : vector<2x32xf32>
    %cst_63 = arith.constant 1.000000e+00 : f32
    %139 = vector.broadcast %cst_63 : f32 to vector<2x32xf32>
    %140 = arith.addf %139, %138 : vector<2x32xf32>
    %141 = arith.divf %139, %140 : vector<2x32xf32>
    %142 = vector.extract_strided_slice %135 {offsets = [0, 32], sizes = [2, 32], strides = [1, 1]} : vector<2x128xf32> to vector<2x32xf32>
    %143 = arith.negf %142 : vector<2x32xf32>
    %144 = math.exp %143 : vector<2x32xf32>
    %cst_64 = arith.constant 1.000000e+00 : f32
    %145 = vector.broadcast %cst_64 : f32 to vector<2x32xf32>
    %146 = arith.addf %145, %144 : vector<2x32xf32>
    %147 = arith.divf %145, %146 : vector<2x32xf32>
    %148 = vector.extract_strided_slice %135 {offsets = [0, 64], sizes = [2, 32], strides = [1, 1]} : vector<2x128xf32> to vector<2x32xf32>
    %149 = math.tanh %148 : vector<2x32xf32>
    %150 = vector.extract_strided_slice %135 {offsets = [0, 96], sizes = [2, 32], strides = [1, 1]} : vector<2x128xf32> to vector<2x32xf32>
    %151 = arith.negf %150 : vector<2x32xf32>
    %152 = math.exp %151 : vector<2x32xf32>
    %cst_65 = arith.constant 1.000000e+00 : f32
    %153 = vector.broadcast %cst_65 : f32 to vector<2x32xf32>
    %154 = arith.addf %153, %152 : vector<2x32xf32>
    %155 = arith.divf %153, %154 : vector<2x32xf32>
    %156 = arith.mulf %147, %129 : vector<2x32xf32>
    %157 = arith.mulf %141, %149 : vector<2x32xf32>
    %158 = arith.addf %156, %157 : vector<2x32xf32>
    %159 = math.tanh %158 : vector<2x32xf32>
    %160 = arith.mulf %155, %159 : vector<2x32xf32>
    %161 = vector.broadcast %127 : i32 to vector<2x32xi32>
    %162 = arith.cmpi slt, %161, %7 : vector<2x32xi32>
    %163 = arith.select %162, %160, %128 : vector<2x32xi1>, vector<2x32xf32>
    %c0_66 = arith.constant 0 : index
    %c0_67 = arith.constant 0 : index
    %164 = vector.load %arg8[%c0_66, %c0_67] : memref<2x32xf32, #tpu.memory_space<vmem>>, vector<2x32xf32>
    tpu.vector_store %arg8[%c0_66, %c0_67], %163 {strides = array<i32>} : memref<2x32xf32, #tpu.memory_space<vmem>>, vector<2x32xf32>,
    %165 = arith.select %162, %158, %129 : vector<2x32xi1>, vector<2x32xf32>
    %c0_68 = arith.constant 0 : index
    %c0_69 = arith.constant 0 : index
    %166 = vector.load %arg9[%c0_68, %c0_69] : memref<2x32xf32, #tpu.memory_space<vmem>>, vector<2x32xf32>
    tpu.vector_store %arg9[%c0_68, %c0_69], %165 {strides = array<i32>} : memref<2x32xf32, #tpu.memory_space<vmem>>, vector<2x32xf32>,
    %cst_70 = arith.constant 0.000000e+00 : f32
    %167 = vector.broadcast %cst_70 : f32 to vector<2x32xf32>
    %168 = arith.select %162, %160, %167 : vector<2x32xi1>, vector<2x32xf32>
    %c0_71 = arith.constant 0 : index
    %169 = arith.index_cast %121 : i32 to index
    %c0_72 = arith.constant 0 : index
    %c0_73 = arith.constant 0 : index
    %170 = vector.load %arg5[%c0_71, %169, %c0_72, %c0_73] : memref<1x4x2x32xf32, #tpu.memory_space<vmem>>, vector<1x1x2x32xf32>
    %171 = vector.shape_cast %170 : vector<1x1x2x32xf32> to vector<2x32xf32>
    %172 = vector.shape_cast %168 : vector<2x32xf32> to vector<1x1x2x32xf32>
    tpu.vector_store %arg5[%c0_71, %169, %c0_72, %c0_73], %172 {strides = array<i32>} : memref<1x4x2x32xf32, #tpu.memory_space<vmem>>, vector<1x1x2x32xf32>,
    %c3_i32_74 = arith.constant 3 : i32
    %c2_i32_75 = arith.constant 2 : i32
    %173 = arith.muli %c2_i32_75, %c3_i32_74 : i32
    %c3_i32_76 = arith.constant 3 : i32
    %174 = arith.subi %c3_i32_76, %173 : i32
    %175 = arith.muli %arg0, %174 : i32
    %176 = arith.addi %c3_i32_74, %175 : i32
    %c4_i32_77 = arith.constant 4 : i32
    %177 = arith.muli %arg1, %c4_i32_77 : i32
    %178 = arith.addi %177, %c3_i32_74 : i32
    %c2_i32_78 = arith.constant 2 : i32
    %179 = arith.muli %c2_i32_78, %178 : i32
    %c7_i32_79 = arith.constant 7 : i32
    %180 = arith.subi %c7_i32_79, %179 : i32
    %181 = arith.muli %arg0, %180 : i32
    %182 = arith.addi %178, %181 : i32
    %c0_80 = arith.constant 0 : index
    %c0_81 = arith.constant 0 : index
    %183 = vector.load %arg8[%c0_80, %c0_81] : memref<2x32xf32, #tpu.memory_space<vmem>>, vector<2x32xf32>
    %c0_82 = arith.constant 0 : index
    %c0_83 = arith.constant 0 : index
    %184 = vector.load %arg9[%c0_82, %c0_83] : memref<2x32xf32, #tpu.memory_space<vmem>>, vector<2x32xf32>
    %c0_84 = arith.constant 0 : index
    %185 = arith.index_cast %176 : i32 to index
    %c0_85 = arith.constant 0 : index
    %c0_86 = arith.constant 0 : index
    %186 = vector.load %arg3[%c0_84, %185, %c0_85, %c0_86] : memref<1x4x2x128xf32, #tpu.memory_space<vmem>>, vector<1x1x2x128xf32>
    %187 = vector.shape_cast %186 : vector<1x1x2x128xf32> to vector<2x128xf32>
    %188 = arith.truncf %183 : vector<2x32xf32> to vector<2x32xbf16>
    %cst_87 = arith.constant dense<0.000000e+00> : vector<2x128xf32>
    %189 = tpu.matmul %188, %4, %cst_87 {dimension_numbers = #tpu.dot_dimension_numbers<[1], [0], [0], [1], [0, 0, 1, 1], [], []>} : vector<2x32xbf16>, vector<32x128xbf16>, vector<2x128xf32> -> vector<2x128xf32>
    %190 = arith.addf %187, %189 : vector<2x128xf32>
    %191 = vector.extract_strided_slice %190 {offsets = [0, 0], sizes = [2, 32], strides = [1, 1]} : vector<2x128xf32> to vector<2x32xf32>
    %192 = arith.negf %191 : vector<2x32xf32>
    %193 = math.exp %192 : vector<2x32xf32>
    %cst_88 = arith.constant 1.000000e+00 : f32
    %194 = vector.broadcast %cst_88 : f32 to vector<2x32xf32>
    %195 = arith.addf %194, %193 : vector<2x32xf32>
    %196 = arith.divf %194, %195 : vector<2x32xf32>
    %197 = vector.extract_strided_slice %190 {offsets = [0, 32], sizes = [2, 32], strides = [1, 1]} : vector<2x128xf32> to vector<2x32xf32>
    %198 = arith.negf %197 : vector<2x32xf32>
    %199 = math.exp %198 : vector<2x32xf32>
    %cst_89 = arith.constant 1.000000e+00 : f32
    %200 = vector.broadcast %cst_89 : f32 to vector<2x32xf32>
    %201 = arith.addf %200, %199 : vector<2x32xf32>
    %202 = arith.divf %200, %201 : vector<2x32xf32>
    %203 = vector.extract_strided_slice %190 {offsets = [0, 64], sizes = [2, 32], strides = [1, 1]} : vector<2x128xf32> to vector<2x32xf32>
    %204 = math.tanh %203 : vector<2x32xf32>
    %205 = vector.extract_strided_slice %190 {offsets = [0, 96], sizes = [2, 32], strides = [1, 1]} : vector<2x128xf32> to vector<2x32xf32>
    %206 = arith.negf %205 : vector<2x32xf32>
    %207 = math.exp %206 : vector<2x32xf32>
    %cst_90 = arith.constant 1.000000e+00 : f32
    %208 = vector.broadcast %cst_90 : f32 to vector<2x32xf32>
    %209 = arith.addf %208, %207 : vector<2x32xf32>
    %210 = arith.divf %208, %209 : vector<2x32xf32>
    %211 = arith.mulf %202, %184 : vector<2x32xf32>
    %212 = arith.mulf %196, %204 : vector<2x32xf32>
    %213 = arith.addf %211, %212 : vector<2x32xf32>
    %214 = math.tanh %213 : vector<2x32xf32>
    %215 = arith.mulf %210, %214 : vector<2x32xf32>
    %216 = vector.broadcast %182 : i32 to vector<2x32xi32>
    %217 = arith.cmpi slt, %216, %7 : vector<2x32xi32>
    %218 = arith.select %217, %215, %183 : vector<2x32xi1>, vector<2x32xf32>
    %c0_91 = arith.constant 0 : index
    %c0_92 = arith.constant 0 : index
    %219 = vector.load %arg8[%c0_91, %c0_92] : memref<2x32xf32, #tpu.memory_space<vmem>>, vector<2x32xf32>
    tpu.vector_store %arg8[%c0_91, %c0_92], %218 {strides = array<i32>} : memref<2x32xf32, #tpu.memory_space<vmem>>, vector<2x32xf32>,
    %220 = arith.select %217, %213, %184 : vector<2x32xi1>, vector<2x32xf32>
    %c0_93 = arith.constant 0 : index
    %c0_94 = arith.constant 0 : index
    %221 = vector.load %arg9[%c0_93, %c0_94] : memref<2x32xf32, #tpu.memory_space<vmem>>, vector<2x32xf32>
    tpu.vector_store %arg9[%c0_93, %c0_94], %220 {strides = array<i32>} : memref<2x32xf32, #tpu.memory_space<vmem>>, vector<2x32xf32>,
    %cst_95 = arith.constant 0.000000e+00 : f32
    %222 = vector.broadcast %cst_95 : f32 to vector<2x32xf32>
    %223 = arith.select %217, %215, %222 : vector<2x32xi1>, vector<2x32xf32>
    %c0_96 = arith.constant 0 : index
    %224 = arith.index_cast %176 : i32 to index
    %c0_97 = arith.constant 0 : index
    %c0_98 = arith.constant 0 : index
    %225 = vector.load %arg5[%c0_96, %224, %c0_97, %c0_98] : memref<1x4x2x32xf32, #tpu.memory_space<vmem>>, vector<1x1x2x32xf32>
    %226 = vector.shape_cast %225 : vector<1x1x2x32xf32> to vector<2x32xf32>
    %227 = vector.shape_cast %223 : vector<2x32xf32> to vector<1x1x2x32xf32>
    tpu.vector_store %arg5[%c0_96, %224, %c0_97, %c0_98], %227 {strides = array<i32>} : memref<1x4x2x32xf32, #tpu.memory_space<vmem>>, vector<1x1x2x32xf32>,
    %c4_i32_99 = arith.constant 4 : i32
    %c1_i32_100 = arith.constant 1 : i32
    %228 = arith.cmpi eq, %arg1, %c1_i32_100 : i32
    %229 = arith.extui %228 : i1 to i32
    %c0_i32_101 = arith.constant 0 : i32
    %230 = arith.cmpi ne, %229, %c0_i32_101 : i32
    scf.if %230 {
      %c0_102 = arith.constant 0 : index
      %c0_103 = arith.constant 0 : index
      %231 = vector.load %arg8[%c0_102, %c0_103] : memref<2x32xf32, #tpu.memory_space<vmem>>, vector<2x32xf32>
      %c0_104 = arith.constant 0 : index
      %c0_105 = arith.constant 0 : index
      %c0_106 = arith.constant 0 : index
      %232 = vector.load %arg6[%c0_104, %c0_105, %c0_106] : memref<1x2x32xf32, #tpu.memory_space<vmem>>, vector<1x2x32xf32>
      %233 = vector.shape_cast %232 : vector<1x2x32xf32> to vector<2x32xf32>
      %234 = vector.shape_cast %231 : vector<2x32xf32> to vector<1x2x32xf32>
      tpu.vector_store %arg6[%c0_104, %c0_105, %c0_106], %234 {strides = array<i32>} : memref<1x2x32xf32, #tpu.memory_space<vmem>>, vector<1x2x32xf32>,
      %c0_107 = arith.constant 0 : index
      %c0_108 = arith.constant 0 : index
      %235 = vector.load %arg9[%c0_107, %c0_108] : memref<2x32xf32, #tpu.memory_space<vmem>>, vector<2x32xf32>
      %c0_109 = arith.constant 0 : index
      %c0_110 = arith.constant 0 : index
      %c0_111 = arith.constant 0 : index
      %236 = vector.load %arg7[%c0_109, %c0_110, %c0_111] : memref<1x2x32xf32, #tpu.memory_space<vmem>>, vector<1x2x32xf32>
      %237 = vector.shape_cast %236 : vector<1x2x32xf32> to vector<2x32xf32>
      %238 = vector.shape_cast %235 : vector<2x32xf32> to vector<1x2x32xf32>
      tpu.vector_store %arg7[%c0_109, %c0_110, %c0_111], %238 {strides = array<i32>} : memref<1x2x32xf32, #tpu.memory_space<vmem>>, vector<1x2x32xf32>,
    } else {
    }
    return
  }
  func.func @transform_0(%arg0: i32, %arg1: i32) -> (i32, i32) {
    %c0_i32 = arith.constant 0 : i32
    %c0_i32_0 = arith.constant 0 : i32
    %c0_i32_1 = arith.constant 0 : i32
    return %c0_i32, %c0_i32_0 : i32, i32
  }
  func.func @transform_1(%arg0: i32, %arg1: i32) -> (i32, i32, i32, i32) {
    %c2_i32 = arith.constant 2 : i32
    %0 = arith.muli %c2_i32, %arg1 : i32
    %c1_i32 = arith.constant 1 : i32
    %1 = arith.subi %c1_i32, %0 : i32
    %2 = arith.muli %arg0, %1 : i32
    %3 = arith.addi %arg1, %2 : i32
    %c0_i32 = arith.constant 0 : i32
    %c0_i32_0 = arith.constant 0 : i32
    %c0_i32_1 = arith.constant 0 : i32
    return %arg0, %3, %c0_i32, %c0_i32_0 : i32, i32, i32, i32
  }
  func.func @transform_2(%arg0: i32, %arg1: i32) -> (i32, i32, i32) {
    %c0_i32 = arith.constant 0 : i32
    %c0_i32_0 = arith.constant 0 : i32
    %c0_i32_1 = arith.constant 0 : i32
    return %arg0, %c0_i32, %c0_i32_0 : i32, i32, i32
  }
  func.func @transform_3(%arg0: i32, %arg1: i32) -> (i32, i32, i32, i32) {
    %c2_i32 = arith.constant 2 : i32
    %0 = arith.muli %c2_i32, %arg1 : i32
    %c1_i32 = arith.constant 1 : i32
    %1 = arith.subi %c1_i32, %0 : i32
    %2 = arith.muli %arg0, %1 : i32
    %3 = arith.addi %arg1, %2 : i32
    %c0_i32 = arith.constant 0 : i32
    %c0_i32_0 = arith.constant 0 : i32
    %c0_i32_1 = arith.constant 0 : i32
    return %arg0, %3, %c0_i32, %c0_i32_0 : i32, i32, i32, i32
  }
  func.func @transform_4(%arg0: i32, %arg1: i32) -> (i32, i32, i32) {
    %c0_i32 = arith.constant 0 : i32
    %c0_i32_0 = arith.constant 0 : i32
    %c0_i32_1 = arith.constant 0 : i32
    return %arg0, %c0_i32, %c0_i32_0 : i32, i32, i32
  }
  func.func @transform_5(%arg0: i32, %arg1: i32) -> (i32, i32, i32) {
    %c0_i32 = arith.constant 0 : i32
    %c0_i32_0 = arith.constant 0 : i32
    %c0_i32_1 = arith.constant 0 : i32
    return %arg0, %c0_i32, %c0_i32_0 : i32, i32, i32
  }
}

</mosaic_0001>

<bundles_post_ra>
// kernel: tpu_custom_call.1
= control target key start
LH: loop header
LB: loop body
LE: loop exit
PB: predicated region body
PF: predicated region fallthrough
CT: control target
= control target key end

     0   :  { %s2339_s0 = inlined_call_operand.hbm [shape: s32[2,1], index: 0, kind: input, shape index: {}]   ;;  %s2340_s1 = inlined_call_operand.hbm [shape: f32[2,8,2,128], index: 1, kind: input, shape index: {}]   ;;  %s2341_s2 = inlined_call_operand.hbm [shape: bf16[2,32,128], index: 2, kind: input, shape index: {}]   ;;  %s2342_s3 = inlined_call_operand.hbm [shape: f32[2,8,2,32], index: 3, kind: output, shape index: {0}]   ;;  %s2343_s4 = inlined_call_operand.hbm [shape: f32[2,2,32], index: 4, kind: output, shape index: {1}]   ;;  %s2344_s5 = inlined_call_operand.hbm [shape: f32[2,2,32], index: 5, kind: output, shape index: {2}]  }
   0x1   :  { %2372 = sst [smem:[#allocation28_spill]] %s2339_s0 }
   0x2   :  { %2373 = sst [smem:[#allocation29_spill]] %s2340_s1 }
   0x3   :  { %2374 = sst [smem:[#allocation30_spill]] %s2341_s2 }
   0x4   :  { %2375 = sst [smem:[#allocation31_spill]] %s2342_s3 }
   0x5   :  { %2376 = sst [smem:[#allocation32_spill]] %s2343_s4 }
   0x6   :  { %2377 = sst [smem:[#allocation33_spill]] %s2344_s5 }
   0x7   :  { %11 = vsyncpa [#allocation5], 0 }
   0x8   :  { %12 = vsyncpa [#allocation8], 0 }
   0x9   :  { %14 = vsyncpa [#allocation8 + $0x1], 0 }
   0xa   :  { %15 = vsyncpa [#allocation6], 0 }
   0xb   :  { %17 = vsyncpa [#allocation6 + $0x1], 0 }
   0xc   :  { %18 = vsyncpa [#allocation12], 0 }
   0xd   :  { %20 = vsyncpa [#allocation12 + $0x1], 0  ;;  %s1717_s18 = smov 0   ;;  %s1719_s19 = smov 0  }
   0xe   :  { %s1721_s20 = smov 0   ;;  %s1723_s21 = smov 0  }
   0xf   :  { %s1725_s22 = smov 0   ;;  %s1727_s23 = smov 0  }
  0x10   :  { %s1729_s24 = smov 0   ;;  %s1731_s25 = smov 0  }
  0x11   :  { %s1733_s26 = smov 0   ;;  %s1735_s27 = smov 0  }
  0x12   :  { %s1737_s28 = smov 0  }
  0x13 LB: > { %2378 = sst [smem:[#allocation19_spill]] %s1647_s23  ;;  %s35_s29 = sadd.s32 1, %s1659_s26  ;;  %s1667_s28 = sphi %s1737_s28, %s26_s28   ;;  %s1663_s27 = sphi %s1735_s27, %s2441_s27   ;;  %s1659_s26 = sphi %s1733_s26, %s2440_s26   ;;  %s1655_s25 = sphi %s1731_s25, %s2439_s25   ;;  %s1651_s24 = sphi %s1729_s24, %s2438_s24   ;;  %s1647_s23 = sphi %s1727_s23, %s2437_s23   ;;  %s1643_s22 = sphi %s1725_s22, %s2446_s22   ;;  %s1639_s21 = sphi %s1723_s21, %s2445_s21   ;;  %s1635_s20 = sphi %s1721_s20, %s2444_s20   ;;  %s1631_s19 = sphi %s1719_s19, %s2443_s19   ;;  %s1627_s18 = sphi %s1717_s18, %s2442_s18  }
  0x14   : > { %2379 = sst [smem:[#allocation20_spill]] %s1651_s24  ;;  %s38_s30 = sadd.s32 1, %s1663_s27 }
  0x15   : > { %2380 = sst [smem:[#allocation21_spill]] %s1655_s25  ;;  %p36_p0 = scmp.ge.s32.totalorder %s35_s29, 2 }
  0x16   : > { %2381 = sst [smem:[#allocation22_spill]] %s1659_s26  ;;  %s1099_s6 = sshll.u32 %s1659_s26, 1 }
  0x17   : > { %2382 = sst [smem:[#allocation23_spill]] %s1663_s27  ;;  %s64_s7 = ssub.s32 1, %s1099_s6 }
  0x18   : > { %s76_s8 = sadd.s32 1, %s1647_s23  ;;  %s2448_s29 = smov (%p36_p0, %s35_s29), 0 }
  0x19   : > { %2383 = sst [smem:[#allocation24_spill]] %s2448_s29  ;;  %s2450_s30 = smov (!%p36_p0, %s38_s30), %s1663_s27 }
  0x1a   : > { %s65_s9 = smul.u32 %s1663_s27, %s64_s7  ;;  %s1100_s10 = sshll.u32 %s2448_s29, 1 }
  0x1b   : > { %p40_p1 = scmp.ge.s32.totalorder %s2450_s30, 2  ;;  %s68_s11 = ssub.s32 1, %s1100_s10 }
  0x1c   : > { %s66_s12 = sadd.s32 %s1659_s26, %s65_s9  ;;  %p2356_p2 = scmp.ne.s32.totalorder %s1647_s23, %s1643_s22 }
  0x1d   : > { %s2452_s30 = smov (%p40_p1, %s2450_s30), 0  ;;  %p2357_p3 = scmp.eq.s32.totalorder %s1667_s28, 0 }
  0x1e   : > { %2384 = sst [smem:[#allocation25_spill]] %s2452_s30  ;;  %s69_s13 = smul.u32 %s68_s11, %s2452_s30 }
  0x1f   : > { %s1790_s14 = ssub.s32 %s1663_s27, %s2452_s30  ;;  %p1797_p4 = por %p2357_p3, %p2356_p2 }
  0x20   : > { %p100_p5 = scmp.eq.s32.totalorder %s1790_s14, 0  ;;  %s70_s16 = sadd.s32 %s69_s13, %s2448_s29 }
  0x21   : > { %p2355_p6 = scmp.lt.s32.totalorder %s1667_s28, 4  ;;  %s72_s17 = ssub.s32 %s66_s12, %s70_s16 }
  0x22   : > { %s238_s6 = sand.u32 1, %s1667_s28   ;;  %s73_s7 = sor.u32 %s72_s17, %s1790_s14 }
  0x23   : > { %p74_p7 = scmp.eq.s32.totalorder %s73_s7, 0  ;;  %s240_s9 = sand.u32 1, %s1647_s23  }
  0x24   : > { %s1106_s10 = sshll.u32 %s240_s9, 3  ;;  %s1108_s11 = sshll.u32 %s66_s12, 2 }
  0x25   : > { %s1808_s30 = scalar_select %p74_p7, %s1647_s23, %s76_s8  }
  0x26   : > { %s1109_s26 = sshll.u32 %s1663_s27, 3  ;;  %s242_s5 = scalar_lea.vmem [#allocation7], %s1106_s10 }
  0x27   : > { %2386 = sst [smem:[#allocation26_spill]] %s1808_s30  ;;  %s252_s3 = sadd.s32 %s1109_s26, %s1108_s11 }
  0x28   : > { %s255_s4 = sshll.u32 %s242_s5, 4  ;;  %s1110_s25 = sshll.u32 %s252_s3, 5  ;;  %s1811_s4 = int_to_ptr.vmem [resolvable:$true] %s255_s4 }
  0x29   : > { %s2387_s1 = sld [smem:[#allocation29_spill]]  ;;  %p1822_p8 = pnand %p2355_p6, %p1797_p4 }
  0x2a   : > { %s1826_s3 = scalar_lea.sflag [#allocation8], %s238_s6 }
  0x2b   : > { %p1391_p10 = pneg %p1822_p8 }
  0x2f   : > { %s1816_s24 = scalar_lea.hbm %s2387_s1, %s1110_s25  ;;  %s1394_s29 = scalar_lea.hbm %s2387_s1, 512 }
  0x30   : > { %s1389_s5 = scalar_lea.hbm %s1816_s24, 128  ;;  %p1395_p13 = scmp.lt.u32.totalorder %s1816_s24, %s2387_s1 }
  0x31   : > { %p1390_p9 = scmp.ne.s32.totalorder %s1816_s24, %s1389_s5  ;;  %p1396_p0 = scmp.lt.u32.totalorder %s1394_s29, %s1389_s5 }
  0x32   : > { %p1398_p4 = scmp.lt.u32.totalorder %s1389_s5, %s1816_s24 }
  0x33   : > { %p1392_p11 = pnand %p1391_p10, %p1390_p9  ;;  %p1397_p1 = por %p1396_p0, %p1395_p13 }
  0x35   : > { %p1393_p12 = pneg %p1392_p11  ;;  %p1399_p7 = por %p1398_p4, %p1397_p1 }
  0x37   : > { %p1400_p6 = pnand %p1399_p7, %p1393_p12 }
  0x39   : > { %1403 = shalt.err (!%p1400_p6)
}
  0x3a   : > { %s1404_s16 = scalar_lea.vmem %s1811_s4, 128  ;;  %s1669_s17 = smov [#allocation7]  }
  0x3b   : > { %p1405_p9 = scmp.ne.s32.totalorder %s1811_s4, %s1404_s16  ;;  %s1409_s6 = sshll.u32 %s1669_s17, 4  ;;  %s1410_s6 = int_to_ptr.vmem [resolvable:$false] %s1409_s6 }
  0x3c   : > { %s1411_s7 = scalar_lea.vmem %s1410_s6, 256  ;;  %p1412_p3 = scmp.lt.s32.totalorder %s1811_s4, %s1410_s6 }
  0x3d   : > { %p1407_p11 = pnand %p1405_p9, %p1391_p10  ;;  %p1413_p13 = scmp.lt.s32.totalorder %s1411_s7, %s1404_s16 }
  0x3f   : > { %p1408_p2 = pneg %p1407_p11  ;;  %p1414_p0 = por %p1413_p13, %p1412_p3 }
  0x41   : > { %p1415_p1 = pnand %p1414_p0, %p1408_p2 }
  0x43   : > { %1418 = shalt.err (!%p1415_p1)
}
  0x44   : > { %s1670_s9 = smov 32   ;;  %s1671_s10 = smov 2  }
  0x45   : > { %1234 = dma.hbm_to_vmem [thread:$0]  (!%p1822_p8), %s1816_s24, 128, %s1811_s4, %s1826_s3, %s1670_s9, %s1670_s9, %s1671_s10  }
  0x46   : > { %s1855_s11 = sadd.s32 4294967295, %s1667_s28   ;;  %s2362_s13 = sadd.s32 4294967294, %s1667_s28  }
  0x47   : > { %p89_p2 = scmp.ne.s32.totalorder %s1643_s22, %s1639_s21  ;;  %p2358_p3 = scmp.eq.s32.totalorder %s1855_s11, 0 }
  0x48   : > { %s102_s5 = sadd.s32 1, %s1635_s20  ;;  %p109_p8 = scmp.ne.s32.totalorder %s1635_s20, %s1631_s19 }
  0x49   : > { %s1865_s25 = scalar_select %p100_p5, %s1635_s20, %s102_s5  }
  0x4a   : > { %p1869_p6 = por %p2358_p3, %p89_p2  ;;  %p115_p10 = scmp.ne.s32.totalorder %s1631_s19, %s1627_s18 }
  0x4b   : > { %2389 = sst [smem:[#allocation27_spill]] %s1865_s25  ;;  %p149_p12 = scmp.eq.s32.totalorder %s1855_s11, 3 }
  0x4c   : > { %s2390_s8 = scalar_select %p1869_p6, 1, 0 }
  0x4d   : > { %p2391_p4 = scmp.eq.s32.totalorder %s1667_s28, 0  ;;  %p155_p9 = scmp.eq.s32.totalorder %s2362_s13, 3 }
  0x4e   : > { %p1884_p11 = por %p115_p10, %p2358_p3  ;;  %p2393_p5 = scmp.ne.s32.totalorder %s1647_s23, %s1643_s22 }
  0x4f   : > { %p111_p7 = por %p109_p8, %p2391_p4  ;;  %p1895_p0 = por %p155_p9, %p89_p2 }
  0x50   : > { %s2392_s4 = scalar_select %p1884_p11, 1, 0 }
  0x51   : > { %p1891_p13 = por %p149_p12, %p2393_p5  ;;  %p1899_p1 = por %p149_p12, %p109_p8 }
  0x52   : > { %s2395_s18 = scalar_select %p1895_p0, 1, 0 }
  0x53   : > { %s2394_s24 = scalar_select %p1891_p13, 1, 0 }
  0x54   : > { %s2396_s14 = scalar_select %p1899_p1, 1, 0 }
  0x55   : > { %p1903_p4 = por %p155_p9, %p115_p10  ;;  %p1103_p3 = scmp.ge.s32.totalorder %s1667_s28, 1 }
  0x56   : > { %p214_p11 = scmp.lt.s32.totalorder %s1667_s28, 5  ;;  %p2398_p6 = scmp.lt.s32.totalorder %s1667_s28, 4 }
  0x57   : > { %s2397_s26 = scalar_select %p1903_p4, 1, 0 }
  0x58   : > { %p1911_p5 = pnand %p2398_p6, %p111_p7  ;;  %p1915_p13 = pnand %p1103_p3, %p214_p11 }
  0x59   : > { %s1672_s15 = smov [#allocation4]   ;;  %s267_s17 = sand.u32 1, %s1635_s20  }
  0x5a   : > { %s2399_s29 = scalar_select %p1911_p5, 1, 0 }
  0x5b   : > { %s2400_s12 = scalar_select %p1915_p13, 1, 0 }
  0x5c   : > { %s227_s16 = sshll.u32 %s1672_s15, 4  ;;  %p1227_p2 = pneg %p1915_p13  ;;  %s228_s16 = int_to_ptr.vmem [resolvable:$true] %s227_s16 }
  0x5d   : > { %s1111_s6 = sshll.u32 %s267_s17, 4  ;;  %s1159_s7 = sshll.u32 %s1663_s27, 8 }
  0x5e   : > { %p2401_p8 = scmp.eq.s32.totalorder %s1855_s11, 0  ;;  %s2403_s2 = sld [smem:[#allocation30_spill]] }
  0x5f   : > { %s269_s1 = scalar_lea.vmem [#allocation9], %s1111_s6  ;;  %s2404_s0 = sld [smem:[#allocation28_spill]] }
  0x60   : > { %p1925_p10 = pnand %p1227_p2, %p2401_p8  ;;  %s276_s30 = sshll.u32 %s269_s1, 4  ;;  %s1934_s30 = int_to_ptr.vmem [resolvable:$true] %s276_s30 }
  0x62   : > { %p1421_p6 = pneg %p1925_p10 }
  0x64   : > { %s1932_s13 = scalar_lea.hbm %s2403_s2, %s1159_s7 }
  0x65   : > { %s1419_s17 = scalar_lea.hbm %s2404_s0, 32 }
  0x66   : > { %p1420_p3 = scmp.ne.s32.totalorder %s2404_s0, %s1419_s17  ;;  %p1426_p9 = scmp.lt.u32.totalorder %s1419_s17, %s2404_s0 }
  0x68   : > { %p1422_p12 = pnand %p1421_p6, %p1420_p3 }
  0x6a   : > { %p1423_p7 = pneg %p1422_p12 }
  0x6c   : > { %p1428_p11 = pnand %p1426_p9, %p1423_p7 }
  0x6e   : > { %1431 = shalt.err (!%p1428_p11)
}
  0x6f   : > { %s1432_s1 = scalar_lea.vmem %s228_s16, 32  ;;  %p1440_p0 = scmp.lt.s32.totalorder %s228_s16, %s228_s16 }
  0x70   : > { %p1433_p2 = scmp.ne.s32.totalorder %s228_s16, %s1432_s1  ;;  %p1441_p1 = scmp.lt.s32.totalorder %s1432_s1, %s1432_s1 }
  0x72   : > { %p1435_p8 = pnand %p1433_p2, %p1421_p6  ;;  %p1442_p13 = por %p1441_p1, %p1440_p0 }
  0x74   : > { %p1436_p4 = pneg %p1435_p8 }
  0x76   : > { %p1443_p5 = pnand %p1442_p13, %p1436_p4 }
  0x78   : > { %1446 = shalt.err (!%p1443_p5)
}
  0x79   : > { %1230 = dma.hbm_to_vmem [thread:$0]  (!%p1925_p10), %s2404_s0, 32, %s228_s16, [#allocation5]  }
  0x7a   : > { %s1447_s25 = scalar_lea.hbm %s1932_s13, 256  ;;  %p2405_p6 = scmp.ne.s32.totalorder %s2399_s29, 0 }
  0x7b   : > { %p1448_p3 = scmp.ne.s32.totalorder %s1932_s13, %s1447_s25  ;;  %s1452_s9 = scalar_lea.hbm %s2403_s2, 512 }
  0x7c   : > { %p1449_p12 = pneg %p2405_p6  ;;  %p1453_p1 = scmp.lt.u32.totalorder %s1932_s13, %s2403_s2 }
  0x7d   : > { %p1454_p4 = scmp.lt.u32.totalorder %s1452_s9, %s1447_s25  ;;  %p1456_p7 = scmp.lt.u32.totalorder %s1447_s25, %s1932_s13 }
  0x7e   : > { %p1450_p13 = pnand %p1449_p12, %p1448_p3 }
  0x7f   : > { %p1455_p5 = por %p1454_p4, %p1453_p1 }
  0x80   : > { %p1451_p0 = pneg %p1450_p13 }
  0x81   : > { %p1457_p10 = por %p1456_p7, %p1455_p5 }
  0x83   : > { %p1458_p9 = pnand %p1457_p10, %p1451_p0 }
  0x85   : > { %1461 = shalt.err (!%p1458_p9)
}
  0x86   : > { %s1462_s16 = scalar_lea.vmem %s1934_s30, 256  ;;  %s1673_s10 = smov [#allocation9]  }
  0x87   : > { %p1463_p11 = scmp.ne.s32.totalorder %s1934_s30, %s1462_s16  ;;  %s1467_s5 = sshll.u32 %s1673_s10, 4  ;;  %s1468_s5 = int_to_ptr.vmem [resolvable:$false] %s1467_s5 }
  0x88   : > { %s1469_s1 = scalar_lea.vmem %s1468_s5, 512  ;;  %p1470_p3 = scmp.lt.s32.totalorder %s1934_s30, %s1468_s5 }
  0x89   : > { %p1465_p2 = pnand %p1463_p11, %p1449_p12  ;;  %p1471_p13 = scmp.lt.s32.totalorder %s1469_s1, %s1462_s16 }
  0x8b   : > { %p1466_p8 = pneg %p1465_p2  ;;  %p1472_p1 = por %p1471_p13, %p1470_p3 }
  0x8d   : > { %p1473_p4 = pnand %p1472_p1, %p1466_p8 }
  0x8f   : > { %1476 = shalt.err (!%p1473_p4)
}
  0x90   : > { %s1674_s23 = smov 64   ;;  %s1675_s27 = smov 4  }
  0x91   : > { %1237 = dma.hbm_to_vmem [thread:$0]  (!%p2405_p6), %s1932_s13, 256, %s1934_s30, %s1826_s3, %s1674_s23, %s1674_s23, %s1675_s27  }
  0x92   : > { %p2406_p12 = scmp.ne.s32.totalorder %s2400_s12, 0 }
  0x93   : > { %p2407_p0 = scmp.eq.s32.totalorder (!%p2406_p12), %s1855_s11, 0 }
  0x94   : > { %288 = sbr.rel (%p2406_p12) target bundleno = 3125 (0xc35), region = 32 }
  0x9b   : > { %1606 = dma.done.wait (%p2407_p0), [#allocation5], 32   ;;  %p2408_p5 = pmov %p2407_p0 }
  0x9c   : > { %s2369_s25 = sand.u32 1, %s1855_s11   ;;  %s2368_s6 = sand.u32 1, %s1643_s22  }
  0x9d   : > { %1608 = vsyncadd (%p2408_p5), [#allocation5], 4294967264  ;;  %s1116_s7 = sshll.u32 %s2368_s6, 3  ;;  %s295_s30 = scalar_lea.sflag [#allocation8], %s2369_s25 }
  0x9e   : > { %s1990_s3 = scalar_lea.vmem [#allocation7], %s1116_s7  ;;  %p2409_p6 = scmp.ne.s32.totalorder %s2390_s8, 0 }
  0xa0   : > { %1610 = dma.done.wait (%p2409_p6), %s295_s30, 128  }
  0xa1   : > { %1612 = vsyncadd (%p2409_p6), %s295_s30, 4294967168  ;;  %s305_s13 = sand.u32 1, %s1631_s19   ;;  %p2410_p7 = scmp.ne.s32.totalorder %s2392_s4, 0 }
  0xa2   : > { %s1117_s29 = sshll.u32 %s305_s13, 4 }
  0xa3   : > { %s307_s12 = scalar_lea.vmem [#allocation9], %s1117_s29 }
  0xa4   : > { %1614 = dma.done.wait (%p2410_p7), %s295_s30, 256  }
  0xa5   : > { %1616 = vsyncadd (%p2410_p7), %s295_s30, 4294967040  ;;  %s2001_s9 = sshll.u32 %s305_s13, 1  ;;  %s2003_s15 = scalar_lea.vmem [#allocation10], %s1116_s7 }
  0xa6   : > { %s341_s17 = scalar_lea.vmem [#allocation11], %s2001_s9  ;;  %s2411_s8 = sld [smem:[#allocation20_spill]] }
  0xac   : > { %p1121_p10 = scmp.ne.s32.totalorder %s2411_s8, 0 }
  0xad   : > { %vm364_vm0 = vcmask (!%p1121_p10), 254976   ;;  %v1676_v0 = vmov (!%p1121_p10), 0.0  }
  0xae   : > { %363 = sbr.rel (%p1121_p10) target bundleno = 181 (0xb5), region = 48  ;;  %365 = vst.msk [vmem:[#allocation2] sm:$0x3] (!%p1121_p10), %vm364_vm0, %v1676_v0  ;;  %366 = vst.msk [vmem:[#allocation3] sm:$0x3] (!%p1121_p10), %vm364_vm0, %v1676_v0 }
  0xb5 PF: > { %v2008_v1 = vld [vmem:[%s307_s12] sm:$0xff]   ;;  %v1677_v2 = vmov 0.0   ;;  %v2013_v3 = vld [vmem:[%s307_s12 + $0x8] sm:$0xff]   ;;  %vm1678_vm1 = vmmov 0   ;;  %s2412_s4 = sld [smem:[#allocation21_spill]]  ;;  %vm399_vm2 = vcmask 261120  }
  0xb6   : > { %1181 = vmatprep.subr.bf16.mxu0 %v1677_v2  ;;  %1189 = vmatprep.subr.bf16.mxu1 %v1677_v2  ;;  %v381_v4 = vld [vmem:[#allocation2] sm:$0x3]  ;;  %v1679_v12 = vmov 0   ;;  %s1680_s1 = smov 64   ;;  %v382_v14 = vld [vmem:[#allocation3] sm:$0x3] }
  0xb7   : > { %1182 = vmatpush3.bf16.msra.mxu0 %v2008_v1  ;;  %1185 = vmatprep.mubr.msk.bf16.mxu0 %vm1678_vm1, %v1677_v2  ;;  %v386_v5 = vpack.c.bf16 %v381_v4, %v381_v4  ;;  %s2370_s23 = smov 32   ;;  %s2413_s27 = sld [smem:[#allocation20_spill]]  ;;  %v371_v21 = vld [vmem:[#allocation4] sm:$0x3]  ;;  %vm483_vm4 = vcmask 254976  }
  0xb8   : > { %1183 = vmatprep.subr.bf16.mxu0 %v1677_v2  ;;  %1190 = vmatpush3.bf16.msra.mxu1 %v2008_v1  ;;  %s1682_s7 = smov 96  }
  0xb9   : > { %1191 = vmatprep.subr.bf16.mxu1 %v1677_v2  ;;  %1193 = vmatprep.mubr.msk.bf16.mxu1 %vm1678_vm1, %v1677_v2 }
  0xba   : > { %1353 = vset.pattern.permute.xlu1 %v1679_v12  ;;  %1354 = vset.pattern.permute.xlu0 %v1679_v12 }
  0xbb   : > { %1184 = vmatpush3.bf16.msra.mxu0 %v2013_v3  ;;  %s1124_s10 = smul.u32 6, %s2412_s4 }
  0xbc   : > { %1192 = vmatpush3.bf16.msra.mxu1 %v2013_v3  ;;  %1197 = vmatprep.subr.bf16.mxu0 %v1677_v2 }
  0xbd   : > { %1205 = vmatprep.subr.bf16.mxu1 %v1677_v2  ;;  %s384_s5 = scalar_lea.vmem %s1990_s3, %s1124_s10 [#allocation7]  ;;  %s2041_s30 = sshll.u32 %s2413_s27, 3 }
  0xbe   : > { %1186 = vmatmul.mubr.msk.bf16.vlgmr.msra.gmra.mrb[0].mxu0 %vm399_vm2, %v386_v5  ;;  %v385_v6 = vld [vmem:[%s384_s5] sm:$0x3]  ;;  %s378_s13 = ssub.s32 7, %s2041_s30  ;;  %s2046_s12 = sshll.u32 %s2413_s27, 2 }
  0xbf   : > { %1198 = vmatpush3.bf16.msra.mxu0 %v2008_v1  ;;  %1201 = vmatprep.mubr.msk.bf16.mxu0 %vm1678_vm1, %v1677_v2  ;;  %s379_s29 = smul.u32 %s2412_s4, %s378_s13  ;;  %s1130_s5 = sshll.u32 %s2412_s4, 1 }
  0xc0   : > { %1199 = vmatprep.subr.bf16.mxu0 %v1677_v2  ;;  %s981_s13 = scalar_lea.vmem %s1990_s3, %s1130_s5 [#allocation7]  ;;  %s499_s6 = sadd.s32 1, %s2046_s12 }
  0xc1   : > { %s380_s8 = sadd.s32 %s2046_s12, %s379_s29  ;;  %v1131_v39 = vld [vmem:[%s981_s13 + $0x2] sm:$0x3]  ;;  %s1161_s29 = sadd.s32 2, %s2041_s30 }
  0xc2   : > { %v2050_v27 = vstv %s380_s8  ;;  %s501_s8 = ssub.s32 7, %s1161_s29  ;;  %p1147_p9 = scmp.ne.s32.totalorder %s2413_s27, 1 }
  0xc3   : > { %1200 = vmatpush3.bf16.msra.mxu0 %v2013_v3  ;;  %s502_s13 = smul.u32 %s2412_s4, %s501_s8  ;;  %s1163_s8 = sadd.s32 4, %s2041_s30 }
  0xc5   : > { %s503_s25 = sadd.s32 %s502_s13, %s499_s6  ;;  %s610_s13 = ssub.s32 7, %s1163_s8 }
  0xc6   : > { %v582_v54 = vstv %s503_s25  ;;  %s607_s25 = ssub.s32 2, %s2412_s4 }
  0xc7   : > { %s2106_s6 = sshll.u32 %s607_s25, 1  ;;  %s611_s25 = smul.u32 %s2412_s4, %s610_s13 }
  0xc8   : > { %s616_s29 = scalar_lea.vmem %s1990_s3, %s2106_s6 [#allocation7] }
  0xc9   : > { %v617_v5 = vld [vmem:[%s616_s29] sm:$0x3]  ;;  %s608_s29 = sadd.s32 2, %s2046_s12 }
  0xca   : > { %s612_s16 = sadd.s32 %s611_s25, %s608_s29  ;;  %s718_s29 = sadd.s32 3, %s2046_s12 }
  0xcb   : > { %s714_s12 = scalar_lea.vmem %s2003_s15, %s2106_s6 [#allocation10] }
 0x191   : > { %v437_v7 = vpop.f32.mrb[0].mxu0 }
 0x192   : > { %v443_v8 = vadd.f32 %v437_v7, %v385_v6  ;;  %v1187_v9 = vpop.f32.mrb[1].mxu0 }
 0x193   : > { %v440_v10 = vpop.f32.mrb[2].mxu0 }
 0x194   : > { %1357 = vtanh.f32 %v443_v8  ;;  %v1188_v11 = vpop.f32.mrb[3].mxu0  ;;  %v1128_v15 = vmul.f32 -1.442695, %v443_v8 }
 0x196   : > { %1359 = vpow2.f32 %v1128_v15 }
 0x19e   : > { %v1358_v13 = vpop.eup %1357 }
 0x19f   : > { %457 = vrot.lane.b32.xlu0 %v1358_v13, %s1680_s1 }
 0x1a0   : > { %v1360_v16 = vpop.eup %1359 }
 0x1a1   : > { %v447_v17 = vadd.f32 1.0, %v1360_v16 }
 0x1a3   : > { %452 = vrot.lane.b32.xlu0 %v382_v14, %s2370_s23  ;;  %1361 = vrcp.f32 %v447_v17 }
 0x1ad   : > { %v1362_v18 = vpop.eup %1361 }
 0x211   : > { %v458_v19 = vpop.permute.xlu0 %457 }
 0x212   : > { %v460_v20 = vmul.f32 %v1362_v18, %v458_v19 }
 0x214   : > { %462 = vrot.lane.b32.xlu1 %v460_v20, %s2370_s23  ;;  %v691_v20 = vstv %s612_s16  ;;  %s1141_s16 = smul.u32 4294967290, %s2412_s4 }
 0x215   : > { %v453_v22 = vpop.permute.xlu0 %452 }
 0x216   : > { %v455_v23 = vmul.f32 %v1362_v18, %v453_v22  ;;  %s992_s8 = scalar_lea.vmem %s1990_s3, %s1141_s16 [#allocation7]  ;;  %s1165_s3 = sadd.s32 6, %s2041_s30 }
 0x217   : > { %s720_s13 = ssub.s32 7, %s1165_s3  ;;  %s984_s30 = scalar_lea.vmem %s2003_s15, %s1130_s5 [#allocation10] }
 0x218   : > { %373 = vperm.xlu1 %1353, %v371_v21   ;;  %s721_s25 = smul.u32 %s2412_s4, %s720_s13 }
 0x21c   : > { %475 = vrot.lane.b32.xlu1 %v381_v4, %s1682_s7 }
 0x286   : > { %v463_v24 = vpop.permute.xlu1 %462 }
 0x287   : > { %v465_v25 = vadd.f32 %v463_v24, %v455_v23 }
 0x289   : > { %1363 = vtanh.f32 %v465_v25 }
 0x293   : > { %v1364_v26 = vpop.eup %1363 }
 0x294   : > { %468 = vrot.lane.b32.xlu0 %v1364_v26, %s1680_s1 }
 0x297   : > { %v2052_v28 = vpop.permute.xlu1 %373 }
 0x298   : > { %vm473_vm3 = vcmp.lt.s32.totalorder %v2050_v27, %v2052_v28  ;;  %vm2087_vm5 = vcmp.lt.s32.totalorder %v582_v54, %v2052_v28  ;;  %vm2117_vm6 = vcmp.lt.s32.totalorder %v691_v20, %v2052_v28 }
 0x299   : > { %v485_v29 = vsel %vm473_vm3, %v465_v25, %v453_v22 }
 0x29a   : > { %487 = vrot.lane.b32.xlu1 %v485_v29, %s1682_s7 }
 0x29b   : > { %v476_v31 = vpop.permute.xlu1 %475 }
 0x306   : > { %v469_v30 = vpop.permute.xlu0 %468 }
 0x307   : > { %v2060_v32 = vmul.f32 %v1362_v18, %v469_v30 }
 0x309   : > { %v478_v33 = vsel %vm473_vm3, %v2060_v32, %v476_v31  ;;  %v491_v57 = vsel %vm473_vm3, %v2060_v32, 0.0 }
 0x30a   : > { %480 = vrot.lane.b32.xlu0 %v478_v33, %s2370_s23 }
 0x30c   : > { %v488_v34 = vpop.permute.xlu1 %487 }
 0x30d   : > { %490 = vst.msk [vmem:[#allocation3] sm:$0x3] %vm483_vm4, %v488_v34 }
 0x314   : > { %v505_v35 = vld [vmem:[#allocation3] sm:$0x3] }
 0x315   : > { %562 = vrot.lane.b32.xlu1 %v505_v35, %s2370_s23 }
 0x37c   : > { %v481_v36 = vpop.permute.xlu0 %480 }
 0x37d   : > { %484 = vst.msk [vmem:[#allocation2] sm:$0x3] %vm483_vm4, %v481_v36 }
 0x384   : > { %v504_v37 = vld [vmem:[#allocation2] sm:$0x3] }
 0x385   : > { %v509_v38 = vpack.c.bf16 %v504_v37, %v504_v37 }
 0x387   : > { %1194 = vmatmul.mubr.msk.bf16.vlgmr.msra.gmra.mrb[0].mxu1 %vm399_vm2, %v509_v38  ;;  %v563_v52 = vpop.permute.xlu1 %562  ;;  %v1142_v38 = vld [vmem:[%s992_s8 + $0x6] sm:$0x3]  ;;  %s722_s8 = sadd.s32 %s721_s25, %s718_s29 }
 0x388   : > { %1206 = vmatpush3.bf16.msra.mxu1 %v2008_v1  ;;  %1209 = vmatprep.mubr.msk.bf16.mxu1 %vm1678_vm1, %v1677_v2 }
 0x389   : > { %1207 = vmatprep.subr.bf16.mxu1 %v1677_v2 }
 0x38c   : > { %1208 = vmatpush3.bf16.msra.mxu1 %v2013_v3 }
 0x45a   : > { %v547_v40 = vpop.f32.mrb[0].mxu1 }
 0x45b   : > { %v553_v41 = vadd.f32 %v1131_v39, %v547_v40  ;;  %v1195_v42 = vpop.f32.mrb[1].mxu1 }
 0x45c   : > { %v550_v43 = vpop.f32.mrb[2].mxu1 }
 0x45d   : > { %1365 = vtanh.f32 %v553_v41  ;;  %v1196_v44 = vpop.f32.mrb[3].mxu1  ;;  %v1133_v46 = vmul.f32 -1.442695, %v553_v41 }
 0x45f   : > { %1367 = vpow2.f32 %v1133_v46 }
 0x467   : > { %v1366_v45 = vpop.eup %1365 }
 0x468   : > { %567 = vrot.lane.b32.xlu0 %v1366_v45, %s1680_s1 }
 0x469   : > { %v1368_v47 = vpop.eup %1367 }
 0x46a   : > { %v557_v48 = vadd.f32 1.0, %v1368_v47 }
 0x46c   : > { %1369 = vrcp.f32 %v557_v48 }
 0x476   : > { %v1370_v49 = vpop.eup %1369 }
 0x477   : > { %v565_v53 = vmul.f32 %v1370_v49, %v563_v52 }
 0x4da   : > { %v568_v50 = vpop.permute.xlu0 %567 }
 0x4db   : > { %v570_v51 = vmul.f32 %v1370_v49, %v568_v50 }
 0x4dd   : > { %572 = vrot.lane.b32.xlu0 %v570_v51, %s2370_s23 }
 0x4e1   : > { %585 = vrot.lane.b32.xlu0 %v504_v37, %s1682_s7 }
 0x54f   : > { %v573_v55 = vpop.permute.xlu0 %572 }
 0x550   : > { %v575_v56 = vadd.f32 %v573_v55, %v565_v53 }
 0x552   : > { %1371 = vtanh.f32 %v575_v56  ;;  %v594_v58 = vsel %vm2087_vm5, %v575_v56, %v563_v52 }
 0x553   : > { %596 = vrot.lane.b32.xlu0 %v594_v58, %s1682_s7  ;;  %v586_v60 = vpop.permute.xlu0 %585 }
 0x55c   : > { %v1372_v59 = vpop.eup %1371 }
 0x55d   : > { %578 = vrot.lane.b32.xlu1 %v1372_v59, %s1680_s1  ;;  %v801_v59 = vstv %s722_s8 }
 0x55e   : > { %vm2156_vm7 = vcmp.lt.s32.totalorder %v801_v59, %v2052_v28 }
 0x5c5   : > { %v597_v61 = vpop.permute.xlu0 %596 }
 0x5c6   : > { %599 = vst.msk [vmem:[#allocation3] sm:$0x3] %vm483_vm4, %v597_v61 }
 0x5cd   : > { %v614_v62 = vld [vmem:[#allocation3] sm:$0x3] }
 0x5ce   : > { %671 = vrot.lane.b32.xlu0 %v614_v62, %s2370_s23 }
 0x5cf   : > { %v579_v63 = vpop.permute.xlu1 %578 }
 0x5d0   : > { %v2097_v0 = vmul.f32 %v1370_v49, %v579_v63 }
 0x5d2   : > { %v588_v1 = vsel %vm2087_vm5, %v2097_v0, %v586_v60  ;;  %v600_v51 = vsel %vm2087_vm5, %v2097_v0, 0.0 }
 0x5d3   : > { %590 = vrot.lane.b32.xlu1 %v588_v1, %s2370_s23 }
 0x640   : > { %v672_v18 = vpop.permute.xlu0 %671 }
 0x645   : > { %v591_v2 = vpop.permute.xlu1 %590 }
 0x646   : > { %593 = vst.msk [vmem:[#allocation2] sm:$0x3] %vm483_vm4, %v591_v2 }
 0x64d   : > { %v613_v3 = vld [vmem:[#allocation2] sm:$0x3] }
 0x64e   : > { %v618_v4 = vpack.c.bf16 %v613_v3, %v613_v3 }
 0x650   : > { %1202 = vmatmul.mubr.msk.bf16.vlgmr.msra.gmra.mrb[4].mxu0 %vm399_vm2, %v618_v4 }
 0x723   : > { %v656_v6 = vpop.f32.mrb[4].mxu0 }
 0x724   : > { %v662_v7 = vadd.f32 %v656_v6, %v617_v5  ;;  %v1203_v8 = vpop.f32.mrb[5].mxu0 }
 0x725   : > { %v659_v9 = vpop.f32.mrb[6].mxu0 }
 0x726   : > { %1373 = vtanh.f32 %v662_v7  ;;  %v1204_v10 = vpop.f32.mrb[7].mxu0  ;;  %v1139_v12 = vmul.f32 -1.442695, %v662_v7 }
 0x728   : > { %1375 = vpow2.f32 %v1139_v12 }
 0x730   : > { %v1374_v11 = vpop.eup %1373 }
 0x731   : > { %676 = vrot.lane.b32.xlu1 %v1374_v11, %s1680_s1 }
 0x732   : > { %v1376_v13 = vpop.eup %1375 }
 0x733   : > { %v666_v14 = vadd.f32 1.0, %v1376_v13 }
 0x735   : > { %1377 = vrcp.f32 %v666_v14 }
 0x73f   : > { %v1378_v15 = vpop.eup %1377 }
 0x740   : > { %v674_v19 = vmul.f32 %v1378_v15, %v672_v18 }
 0x7a3   : > { %v677_v16 = vpop.permute.xlu1 %676 }
 0x7a4   : > { %v679_v17 = vmul.f32 %v1378_v15, %v677_v16 }
 0x7a6   : > { %681 = vrot.lane.b32.xlu1 %v679_v17, %s2370_s23 }
 0x7aa   : > { %694 = vrot.lane.b32.xlu1 %v613_v3, %s1682_s7 }
 0x818   : > { %v682_v21 = vpop.permute.xlu1 %681 }
 0x819   : > { %v684_v22 = vadd.f32 %v682_v21, %v674_v19 }
 0x81b   : > { %1379 = vtanh.f32 %v684_v22  ;;  %v703_v24 = vsel %vm2117_vm6, %v684_v22, %v672_v18 }
 0x81c   : > { %705 = vrot.lane.b32.xlu1 %v703_v24, %s1682_s7  ;;  %v695_v26 = vpop.permute.xlu1 %694 }
 0x825   : > { %v1380_v25 = vpop.eup %1379 }
 0x826   : > { %687 = vrot.lane.b32.xlu0 %v1380_v25, %s1680_s1 }
 0x88e   : > { %v706_v29 = vpop.permute.xlu1 %705 }
 0x88f   : > { %708 = vst.msk [vmem:[#allocation3] sm:$0x3] %vm483_vm4, %v706_v29 }
 0x896   : > { %v724_v30 = vld [vmem:[#allocation3] sm:$0x3] }
 0x897   : > { %781 = vrot.lane.b32.xlu1 %v724_v30, %s2370_s23 }
 0x898   : > { %v688_v31 = vpop.permute.xlu0 %687 }
 0x899   : > { %v690_v33 = vmul.f32 %v1378_v15, %v688_v31 }
 0x89b   : > { %v697_v34 = vsel %vm2117_vm6, %v690_v33, %v695_v26  ;;  %v709_v58 = vsel %vm2117_vm6, %v690_v33, 0.0 }
 0x89c   : > { %699 = vrot.lane.b32.xlu0 %v697_v34, %s2370_s23 }
 0x909   : > { %v782_v52 = vpop.permute.xlu1 %781 }
 0x90e   : > { %v700_v35 = vpop.permute.xlu0 %699 }
 0x90f   : > { %702 = vst.msk [vmem:[#allocation2] sm:$0x3] %vm483_vm4, %v700_v35 }
 0x916   : > { %v723_v36 = vld [vmem:[#allocation2] sm:$0x3] }
 0x917   : > { %v728_v37 = vpack.c.bf16 %v723_v36, %v723_v36 }
 0x919   : > { %1210 = vmatmul.mubr.msk.bf16.vlgmr.msra.gmra.mrb[4].mxu1 %vm399_vm2, %v728_v37 }
 0x9ec   : > { %v766_v39 = vpop.f32.mrb[4].mxu1 }
 0x9ed   : > { %v772_v40 = vadd.f32 %v1142_v38, %v766_v39  ;;  %v1211_v41 = vpop.f32.mrb[5].mxu1 }
 0x9ee   : > { %v769_v42 = vpop.f32.mrb[6].mxu1 }
 0x9ef   : > { %1381 = vtanh.f32 %v772_v40  ;;  %v1212_v43 = vpop.f32.mrb[7].mxu1  ;;  %v1144_v45 = vmul.f32 -1.442695, %v772_v40 }
 0x9f1   : > { %1383 = vpow2.f32 %v1144_v45 }
 0x9f9   : > { %v1382_v44 = vpop.eup %1381 }
 0x9fa   : > { %786 = vrot.lane.b32.xlu0 %v1382_v44, %s1680_s1 }
 0x9fb   : > { %v1384_v46 = vpop.eup %1383 }
 0x9fc   : > { %v776_v47 = vadd.f32 1.0, %v1384_v46 }
 0x9fe   : > { %1385 = vrcp.f32 %v776_v47 }
 0xa08   : > { %v1386_v48 = vpop.eup %1385 }
 0xa09   : > { %v784_v53 = vmul.f32 %v1386_v48, %v782_v52 }
 0xa6c   : > { %v787_v49 = vpop.permute.xlu0 %786 }
 0xa6d   : > { %v789_v50 = vmul.f32 %v1386_v48, %v787_v49 }
 0xa6f   : > { %791 = vrot.lane.b32.xlu0 %v789_v50, %s2370_s23 }
 0xa73   : > { %804 = vrot.lane.b32.xlu0 %v723_v36, %s1682_s7 }
 0xa77   : > { %602 = vrot.lane.b32.xlu0 %v600_v51, %s2370_s23 }
 0xae1   : > { %v792_v54 = vpop.permute.xlu0 %791 }
 0xae2   : > { %v794_v55 = vadd.f32 %v792_v54, %v784_v53 }
 0xae4   : > { %1387 = vtanh.f32 %v794_v55  ;;  %v813_v27 = vsel %vm2156_vm7, %v794_v55, %v782_v52 }
 0xae5   : > { %v805_v32 = vpop.permute.xlu0 %804 }
 0xae9   : > { %v603_v0 = vpop.permute.xlu0 %602 }
 0xaee   : > { %v1388_v56 = vpop.eup %1387 }
 0xaef   : > { %797 = vrot.lane.b32.xlu1 %v1388_v56, %s1680_s1  ;;  %s496_s1 = scalar_lea.vmem %s2003_s15, %s1124_s10 [#allocation10]  ;;  %s996_s10 = scalar_lea.vmem %s2003_s15, %s1141_s16 [#allocation10] }
 0xaf3   : > { %493 = vrot.lane.b32.xlu1 %v491_v57, %s2370_s23 }
 0xaf7   : > { %711 = vrot.lane.b32.xlu1 %v709_v58, %s2370_s23 }
 0xafb   : > { %815 = vrot.lane.b32.xlu1 %v813_v27, %s1682_s7  ;;  %s2420_s7 = scalar_lea.vmem (!%p1147_p9), [#allocation13], %s2001_s9 }
 0xb61   : > { %v798_v61 = vpop.permute.xlu1 %797 }
 0xb62   : > { %v800_v62 = vmul.f32 %v1386_v48, %v798_v61 }
 0xb64   : > { %v807_v28 = vsel %vm2156_vm7, %v800_v62, %v805_v32  ;;  %v819_v1 = vsel %vm2156_vm7, %v800_v62, 0.0 }
 0xb65   : > { %809 = vrot.lane.b32.xlu0 %v807_v28, %s2370_s23  ;;  %v494_v63 = vpop.permute.xlu1 %493 }
 0xb66   : > { %497 = vst.msk [vmem:[%s496_s1] sm:$0x3] %vm483_vm4, %v494_v63 }
 0xb67   : > { %1135 = vst.msk [vmem:[%s984_s30 + $0x2] sm:$0x3] %vm483_vm4, %v603_v0 }
 0xb69   : > { %821 = vrot.lane.b32.xlu0 %v819_v1, %s2370_s23  ;;  %v712_v2 = vpop.permute.xlu1 %711 }
 0xb6a   : > { %715 = vst.msk [vmem:[%s714_s12] sm:$0x3] %vm483_vm4, %v712_v2 }
 0xb6d   : > { %v816_v3 = vpop.permute.xlu1 %815 }
 0xb6e   : > { %818 = vst.msk [vmem:[#allocation3] sm:$0x3] %vm483_vm4, %v816_v3 }
 0xb75   : > { %v832_v7 = vld [vmem:[#allocation3] sm:$0x3] (!%p1147_p9) }
 0xb76   : > { %833 = vst.msk [vmem:[%s2420_s7] sm:$0x3] (!%p1147_p9), %vm483_vm4, %v832_v7 }
 0xbd6   : > { %829 = sbr.rel (%p1147_p9) target bundleno = 3041 (0xbe1), region = 52 }
 0xbd7   : > { %v810_v4 = vpop.permute.xlu0 %809 }
 0xbd8   : > { %812 = vst.msk [vmem:[#allocation2] sm:$0x3] %vm483_vm4, %v810_v4 }
 0xbdb   : > { %v822_v5 = vpop.permute.xlu0 %821 }
 0xbdc   : > { %1146 = vst.msk [vmem:[%s996_s10 + $0x6] sm:$0x3] %vm483_vm4, %v822_v5 }
 0xbdf   : > { %v830_v6 = vld [vmem:[#allocation2] sm:$0x3] }
 0xbe0   : > { %831 = vst.msk [vmem:[%s341_s17] sm:$0x3] %vm483_vm4, %v830_v6 }
 0xbe1 PF: > { %s2421_s5 = sld [smem:[#allocation21_spill]]  ;;  %s2422_s16 = sld [smem:[#allocation32_spill]] }
 0xbe2   : > { %s880_s13 = sshll.u32 %s341_s17, 4  ;;  %s2423_s25 = sand.u32 1, %s1855_s11   ;;  %s881_s13 = int_to_ptr.vmem [resolvable:$true] %s880_s13 }
 0xbe3   : > { %s2205_s29 = scalar_lea.sflag [#allocation12], %s2423_s25  ;;  %s1477_s8 = scalar_lea.vmem %s881_s13, 32 }
 0xbe4   : > { %p1478_p11 = scmp.ne.s32.totalorder %s881_s13, %s1477_s8  ;;  %p2424_p2 = scmp.ne.s32.totalorder %s2396_s14, 0 }
 0xbe5   : > { %s1683_s1 = smov [#allocation11]  }
 0xbe6   : > { %p1479_p8 = pnand %p1478_p11, %p2424_p2  ;;  %s1481_s30 = sshll.u32 %s1683_s1, 4  ;;  %s1482_s30 = int_to_ptr.vmem [resolvable:$false] %s1481_s30 }
 0xbe7   : > { %s1155_s4 = sshll.u32 %s2421_s5, 5  ;;  %s1483_s12 = scalar_lea.vmem %s1482_s30, 64 }
 0xbe8   : > { %s2199_s3 = scalar_lea.hbm %s2422_s16, %s1155_s4  ;;  %p1480_p3 = pneg %p1479_p8 }
 0xbe9   : > { %p1484_p13 = scmp.lt.s32.totalorder %s881_s13, %s1482_s30  ;;  %p1485_p1 = scmp.lt.s32.totalorder %s1483_s12, %s1477_s8 }
 0xbeb   : > { %p1486_p4 = por %p1485_p1, %p1484_p13 }
 0xbed   : > { %p1487_p12 = pnand %p1486_p4, %p1480_p3 }
 0xbef   : > { %1490 = shalt.err (!%p1487_p12)
}
 0xbf0   : > { %s1491_s11 = scalar_lea.hbm %s2199_s3, 32  ;;  %s1495_s7 = scalar_lea.hbm %s2422_s16, 64 }
 0xbf1   : > { %p1492_p0 = scmp.ne.s32.totalorder %s2199_s3, %s1491_s11  ;;  %p1496_p7 = scmp.lt.u32.totalorder %s2199_s3, %s2422_s16 }
 0xbf2   : > { %p1497_p10 = scmp.lt.u32.totalorder %s1495_s7, %s1491_s11  ;;  %p1499_p11 = scmp.lt.u32.totalorder %s1491_s11, %s2199_s3 }
 0xbf3   : > { %p1493_p5 = pnand %p1492_p0, %p2424_p2 }
 0xbf4   : > { %p1498_p9 = por %p1497_p10, %p1496_p7 }
 0xbf5   : > { %p1494_p6 = pneg %p1493_p5 }
 0xbf6   : > { %p1500_p8 = por %p1499_p11, %p1498_p9 }
 0xbf8   : > { %p1501_p3 = pnand %p1500_p8, %p1494_p6 }
 0xbfa   : > { %1504 = shalt.err (!%p1501_p3)
}
 0xbfb   : > { %s2425_s25 = sld [smem:[#allocation20_spill]]  ;;  %s864_s30 = sshll.u32 %s2003_s15, 4  ;;  %s2229_s30 = int_to_ptr.vmem [resolvable:$true] %s864_s30 }
 0xbfc   : > { %1222 = dma.vmem_to_hbm [thread:$0]  (%p2424_p2), %s881_s13, 32, %s2199_s3, %s2205_s29  }
 0xbfd   : > { %s1153_s11 = sshll.u32 %s2421_s5, 3  ;;  %s2426_s10 = scalar_lea.vmem [#allocation13], %s2001_s9 }
 0xbfe   : > { %s893_s7 = sshll.u32 %s2426_s10, 4  ;;  %s2427_s3 = sld [smem:[#allocation33_spill]]  ;;  %s2241_s7 = int_to_ptr.vmem [resolvable:$true] %s893_s7 }
 0xbff   : > { %s2428_s2 = sld [smem:[#allocation31_spill]]  ;;  %p2430_p1 = scmp.ne.s32.totalorder %s2394_s24, 0 }
 0xc01   : > { %s1151_s8 = sshll.u32 %s2425_s25, 1 }
 0xc02   : > { %s853_s1 = ssub.s32 1, %s1151_s8 }
 0xc03   : > { %s854_s12 = smul.u32 %s2421_s5, %s853_s1  ;;  %s1684_s5 = smov [#allocation10]  }
 0xc04   : > { %s2239_s13 = scalar_lea.hbm %s2427_s3, %s1155_s4  ;;  %s1509_s0 = sshll.u32 %s1684_s5, 4  ;;  %s1510_s0 = int_to_ptr.vmem [resolvable:$false] %s1509_s0 }
 0xc05   : > { %s855_s17 = sadd.s32 %s2425_s25, %s854_s12  ;;  %s2429_s25 = sand.u32 1, %s1643_s22  }
 0xc06   : > { %s1152_s27 = sshll.u32 %s855_s17, 2  ;;  %s2250_s9 = scalar_lea.sflag [#allocation6], %s2429_s25 }
 0xc07   : > { %s861_s6 = sadd.s32 %s1153_s11, %s1152_s27  ;;  %s1505_s12 = scalar_lea.vmem %s2229_s30, 128 }
 0xc08   : > { %s1154_s8 = sshll.u32 %s861_s6, 5  ;;  %p1506_p13 = scmp.ne.s32.totalorder %s2229_s30, %s1505_s12 }
 0xc09   : > { %s2246_s16 = scalar_lea.hbm %s2428_s2, %s1154_s8  ;;  %s1511_s23 = scalar_lea.vmem %s1510_s0, 256 }
 0xc0a   : > { %p1507_p4 = pnand %p1506_p13, %p2430_p1  ;;  %p1512_p0 = scmp.lt.s32.totalorder %s2229_s30, %s1510_s0 }
 0xc0b   : > { %p1513_p5 = scmp.lt.s32.totalorder %s1511_s23, %s1505_s12 }
 0xc0c   : > { %p1508_p12 = pneg %p1507_p4 }
 0xc0d   : > { %p1514_p6 = por %p1513_p5, %p1512_p0 }
 0xc0f   : > { %p1515_p7 = pnand %p1514_p6, %p1508_p12 }
 0xc11   : > { %1518 = shalt.err (!%p1515_p7)
}
 0xc12   : > { %s1519_s4 = scalar_lea.hbm %s2246_s16, 128  ;;  %s1523_s10 = scalar_lea.hbm %s2428_s2, 512 }
 0xc13   : > { %p1520_p10 = scmp.ne.s32.totalorder %s2246_s16, %s1519_s4  ;;  %p1524_p8 = scmp.lt.u32.totalorder %s2246_s16, %s2428_s2 }
 0xc14   : > { %p1525_p3 = scmp.lt.u32.totalorder %s1523_s10, %s1519_s4  ;;  %p1527_p4 = scmp.lt.u32.totalorder %s1519_s4, %s2246_s16 }
 0xc15   : > { %p1521_p9 = pnand %p1520_p10, %p2430_p1 }
 0xc16   : > { %p1526_p13 = por %p1525_p3, %p1524_p8 }
 0xc17   : > { %p1522_p11 = pneg %p1521_p9 }
 0xc18   : > { %p1528_p12 = por %p1527_p4, %p1526_p13 }
 0xc1a   : > { %p1529_p0 = pnand %p1528_p12, %p1522_p11 }
 0xc1c   : > { %1532 = shalt.err (!%p1529_p0)
}
 0xc1d   : > { %s1685_s8 = smov 2   ;;  %s2431_s15 = smov 32  }
 0xc1e   : > { %1221 = dma.vmem_to_hbm [thread:$0]  (%p2430_p1), %s2229_s30, 128, %s2246_s16, %s2250_s9, %s2431_s15, %s2431_s15, %s1685_s8  }
 0xc1f   : > { %s1533_s1 = scalar_lea.vmem %s2241_s7, 32  ;;  %s1686_s25 = smov [#allocation13]  }
 0xc20   : > { %p1534_p5 = scmp.ne.s32.totalorder %s2241_s7, %s1533_s1  ;;  %s1537_s12 = sshll.u32 %s1686_s25, 4  ;;  %s1538_s12 = int_to_ptr.vmem [resolvable:$false] %s1537_s12 }
 0xc21   : > { %s1539_s5 = scalar_lea.vmem %s1538_s12, 64  ;;  %p1540_p10 = scmp.lt.s32.totalorder %s2241_s7, %s1538_s12 }
 0xc22   : > { %p1535_p6 = pnand %p1534_p5, %p2424_p2  ;;  %p1541_p9 = scmp.lt.s32.totalorder %s1539_s5, %s1533_s1 }
 0xc24   : > { %p1536_p7 = pneg %p1535_p6  ;;  %p1542_p11 = por %p1541_p9, %p1540_p10 }
 0xc26   : > { %p1543_p8 = pnand %p1542_p11, %p1536_p7 }
 0xc28   : > { %1546 = shalt.err (!%p1543_p8)
}
 0xc29   : > { %s1547_s24 = scalar_lea.hbm %s2239_s13, 32  ;;  %s1551_s9 = scalar_lea.hbm %s2427_s3, 64 }
 0xc2a   : > { %p1548_p1 = scmp.ne.s32.totalorder %s2239_s13, %s1547_s24  ;;  %p1552_p4 = scmp.lt.u32.totalorder %s2239_s13, %s2427_s3 }
 0xc2b   : > { %p1553_p12 = scmp.lt.u32.totalorder %s1551_s9, %s1547_s24  ;;  %p1555_p5 = scmp.lt.u32.totalorder %s1547_s24, %s2239_s13 }
 0xc2c   : > { %p1549_p3 = pnand %p1548_p1, %p2424_p2 }
 0xc2d   : > { %p1554_p0 = por %p1553_p12, %p1552_p4 }
 0xc2e   : > { %p1550_p13 = pneg %p1549_p3 }
 0xc2f   : > { %p1556_p6 = por %p1555_p5, %p1554_p0 }
 0xc31   : > { %p1557_p7 = pnand %p1556_p6, %p1550_p13 }
 0xc33   : > { %1560 = shalt.err (!%p1557_p7)
}
 0xc34   : > { %1223 = dma.vmem_to_hbm [thread:$0]  (%p2424_p2), %s2241_s7, 32, %s2239_s13, %s2205_s29  }
 0xc35 PF: > { %p1251_p10 = scmp.ge.s32.totalorder %s1667_s28, 2  ;;  %s905_s4 = sand.u32 1, %s1639_s21  }
 0xc36   : > { %p2432_p9 = scmp.ne.s32.totalorder %s2395_s18, 0  ;;  %s906_s11 = scalar_lea.sflag [#allocation6], %s905_s4 }
 0xc38   : > { %p1239_p11 = pnand %p1251_p10, %p2432_p9 }
 0xc3a   : > { %1618 = dma.done.wait (!%p1239_p11), %s906_s11, 128  }
 0xc3b   : > { %1620 = vsyncadd (!%p1239_p11), %s906_s11, 4294967168  ;;  %s2433_s17 = sadd.s32 4294967294, %s1667_s28   ;;  %p2434_p8 = scmp.ne.s32.totalorder %s2397_s26, 0 }
 0xc3c   : > { %s914_s10 = sand.u32 1, %s2433_s17  }
 0xc3d   : > { %p1242_p1 = pnand %p1251_p10, %p2434_p8  ;;  %s915_s14 = scalar_lea.sflag [#allocation12], %s914_s10 }
 0xc3f   : > { %1622 = dma.done.wait (!%p1242_p1), %s915_s14, 64  }
 0xc40   : > { %1624 = vsyncadd (!%p1242_p1), %s915_s14, 4294967232  ;;  %s26_s28 = sadd.s32 1, %s1667_s28   ;;  %s2435_s21 = sld [smem:[#allocation27_spill]] }
 0xc41   : > { %p23_p2 = scmp.ge.s32.totalorder %s26_s28, 6   ;;  %s2436_s29 = sld [smem:[#allocation19_spill]] }
 0xc42   : > { %s2437_s23 = sld [smem:[#allocation26_spill]]  ;;  %s2438_s24 = sld [smem:[#allocation22_spill]] }
 0xc43   : > { %s2439_s25 = sld [smem:[#allocation23_spill]]  ;;  %s2440_s26 = sld [smem:[#allocation24_spill]] }
 0xc44   : > { %s2441_s27 = sld [smem:[#allocation25_spill]]  ;;  %s2442_s18 = smov %s1631_s19 }
 0xc45   : > { %s2443_s19 = smov %s1635_s20  ;;  %25 = sbr.rel (!%p23_p2) target bundleno = 19 (0x13), region = 141 }
 0xc46   : > { %s2444_s20 = smov %s2435_s21  ;;  %s2445_s21 = smov %s1643_s22 }
 0xc47   : > { %s2446_s22 = smov %s2436_s29 }
 0xc4c   :  { %929 = vsyncpa [#allocation5], 1 }
 0xc4d   :  { %931 = vsyncpa [#allocation5 + $0x1], 1 }
 0xc4e   :  { %932 = vsyncpa [#allocation8], 1 }
 0xc4f   :  { %934 = vsyncpa [#allocation8 + $0x1], 1 }
 0xc50   :  { %935 = vsyncpa [#allocation6], 1 }
 0xc51   :  { %937 = vsyncpa [#allocation6 + $0x1], 1 }
 0xc52   :  { %938 = vsyncpa [#allocation12], 1 }
 0xc53   :  { %940 = vsyncpa [#allocation12 + $0x1], 1 }

</bundles_post_ra>
